<compile_context>
chip_gen: v7x
topology: tpu7x:2x2x1
jax: 0.10.0
libtpu: 0.0.40
codegen_flags: <defaults>
</compile_context>

<pallas_src>
import jax
import jax.numpy as jnp
from jax.experimental import pallas as pl
from jax.experimental.pallas import tpu as pltpu


# ----------------------------------------------------------------------------
# fused Pallas kernel (one grid step == one batch element)
# ----------------------------------------------------------------------------
def _encoder_kernel(x_ref, eps_ref, w3_ref, b3_ref, scale_ref, wz_ref, bz_ref,
                    we_ref, be_ref, wd_ref, bd_ref, wp_ref, bp_ref, h_ref,
                    o_ref):
    S = x_ref.shape[1]
    C = x_ref.shape[2]
    idx = jax.lax.broadcasted_iota(jnp.int32, (S, 1), 0)

    def shifted(t):
        # zero-padded neighbours along the segment (sublane) axis via XLU roll
        tp = jnp.where(idx == 0, 0.0, pltpu.roll(t, shift=1, axis=0))
        tn = jnp.where(idx == S - 1, 0.0, pltpu.roll(t, shift=S - 1, axis=0))
        return tp, tn

    def conv3(t, w, b):
        # Conv1d(k=3, pad=1) as a single (S, 3C) @ (3C, Cout) MXU matmul
        tp, tn = shifted(t)
        t3 = jnp.concatenate([tp, t, tn], axis=-1)
        return jnp.dot(t3, w, preferred_element_type=jnp.float32) + b

    def res_cell(t, wi, scale):
        hh = jnp.maximum(conv3(t, w3_ref[wi], b3_ref[wi]), 0.0)
        hh = conv3(hh, w3_ref[wi + 1], b3_ref[wi + 1])
        return t + scale * hh

    def ir_cell(t, i):
        # expand 1x1 (C->2C) -> relu -> depthwise k=3 -> relu -> project 1x1 -> +x
        hh = jnp.dot(t, we_ref[i], preferred_element_type=jnp.float32) + be_ref[i]
        hh = jnp.maximum(hh, 0.0)
        hp, hn = shifted(hh)
        wd = wd_ref[i]                                   # (3, 2C)
        hh = hp * wd[0:1] + hh * wd[1:2] + hn * wd[2:3] + bd_ref[i]
        hh = jnp.maximum(hh, 0.0)
        hh = jnp.dot(hh, wp_ref[i], preferred_element_type=jnp.float32) + bp_ref[i]
        return t + hh

    def latent(t, zi, e):
        # fused mu||logvar conv (3C, 2C) + reparameterize
        y = conv3(t, wz_ref[zi], bz_ref[zi])             # (S, 2C)
        mu, lv = y[:, :C], y[:, C:]
        return mu + e * jnp.exp(0.5 * lv), mu, lv

    x = x_ref[0]                                         # (S, C)
    eps = eps_ref[0]                                     # (S, 3C)

    x0 = conv3(x, w3_ref[0], b3_ref[0])                  # segment_processor
    res1 = res_cell(x0, 1, 1.0)                          # res_cell1
    res2 = res_cell(res1, 3, 1.0)                        # res_cell2
    res3 = res_cell(res2, 5, scale_ref[...])             # SResidualCell (assumed)

    z1, mu1, lv1 = latent(res3, 0, eps[:, 0:C])
    ir1 = ir_cell(z1 + h_ref[...], 0)                    # ir_cell1(z1 + h)
    z2, mu2, lv2 = latent(res2 + ir1, 1, eps[:, C:2 * C])
    ir2 = ir_cell(ir1 + z2, 1)                           # ir_cell2(ir1 + z2)
    z3, mu3, lv3 = latent(res1 + ir2, 2, eps[:, 2 * C:3 * C])

    o_ref[0] = jnp.concatenate(
        [z1, mu1, lv1, z2, mu2, lv2, z3, mu3, lv3, res3], axis=-1
    ).astype(o_ref.dtype)


# ----------------------------------------------------------------------------
# pallas_call wrapper
# ----------------------------------------------------------------------------
_WEIGHT_ORDER = ("w3", "b3", "scale", "wz", "bz",
                 "we", "be", "wd", "bd", "wp", "bp", "h")

_OUT_NAMES = ("z1", "mu_z1", "logvar_z1",
              "z2", "mu_z2", "logvar_z2",
              "z3", "mu_z3", "logvar_z3", "res3_out")


def _fused_forward(params, x, eps):
    B, S, C = x.shape

    def data_spec(last):
        return pl.BlockSpec((1, S, last), lambda b: (b, 0, 0))

    def const_spec(arr):
        zeros = (0,) * arr.ndim
        return pl.BlockSpec(arr.shape, lambda b, _z=zeros: _z)

    weights = [params[k] for k in _WEIGHT_ORDER]

    return pl.pallas_call(
        _encoder_kernel,
        out_shape=jax.ShapeDtypeStruct((B, S, 10 * C), jnp.float32),
        grid=(B,),
        in_specs=[data_spec(C), data_spec(3 * C)]
                 + [const_spec(w) for w in weights],
        out_specs=pl.BlockSpec((1, S, 10 * C), lambda b: (b, 0, 0)),
        compiler_params=pltpu.CompilerParams(
            dimension_semantics=("parallel",)),
    )(x, eps, *weights)


def segment_hierarchy_encoder(params, byte_res3_out, rng, *, torch_layout=False):
    """byte_res3_out: (B, S, C) channels-last.

    Returns a dict of 10 tensors.  torch_layout=False (default, lane-dense)
    keeps (B, S, C); torch_layout=True matches PyTorch's Conv1d (B, C, S).
    """
    B, S, C = byte_res3_out.shape
    eps = jax.random.normal(rng, (B, S, 3 * C), jnp.float32)
    packed = _fused_forward(params, byte_res3_out.astype(jnp.float32), eps)

    out = {}
    for i, name in enumerate(_OUT_NAMES):
        t = packed[..., i * C:(i + 1) * C]
        out[name] = jnp.transpose(t, (0, 2, 1)) if torch_layout else t
    return out


# ----------------------------------------------------------------------------
# deterministic parameter init (PyTorch Conv1d-style uniform fan-in bounds)
# ----------------------------------------------------------------------------
def init_params(key, c):
    ks = jax.random.split(key, 10)
    c3 = 3 * c

    def u(k, shape, bound):
        return jax.random.uniform(k, shape, jnp.float32, -bound, bound)

    b_k3 = 1.0 / (3.0 * c) ** 0.5      # Conv1d(k=3) fan-in bound
    b_1x1_c = 1.0 / c ** 0.5           # 1x1 conv, Cin = C
    b_1x1_2c = 1.0 / (2.0 * c) ** 0.5  # 1x1 conv, Cin = 2C
    b_dw = 1.0 / 3.0 ** 0.5            # depthwise k=3, fan-in = 3

    return {
        # k=3 convs (C->C): [segment_processor, rc1.w1, rc1.w2, rc2.w1, rc2.w2,
        #                    rc3.w1, rc3.w2] stacked -> (7, 3C, C)
        "w3": u(ks[0], (7, c3, c), b_k3),
        "b3": u(ks[1], (7, 1, c), b_k3),
        "scale": jnp.full((1, c), 0.1, jnp.float32),   # SResidualCell scale (assumed)
        # latent convs, mu||logvar concatenated along Cout: (3, 3C, 2C)
        "wz": u(ks[2], (3, c3, 2 * c), b_k3),
        "bz": u(ks[3], (3, 1, 2 * c), b_k3),
        # inverted residual cells (2 of them), 2x expansion
        "we": u(ks[4], (2, c, 2 * c), b_1x1_c),
        "be": u(ks[5], (2, 1, 2 * c), b_1x1_c),
        "wd": u(ks[6], (2, 3, 2 * c), b_dw),
        "bd": u(ks[7], (2, 1, 2 * c), b_dw),
        "wp": u(ks[8], (2, 2 * c, c), b_1x1_2c),
        "bp": u(ks[9], (2, 1, c), b_1x1_2c),
        # torch: zeros(1, C, 1) -> per-channel bias broadcast over segments
        "h": jnp.zeros((1, c), jnp.float32),
    }


# ----------------------------------------------------------------------------
# pure-JAX reference (same math, channels-last) for in-script validation
# ----------------------------------------------------------------------------
def reference_forward(params, x, rng):
    B, S, C = x.shape
    eps = jax.random.normal(rng, (B, S, 3 * C), jnp.float32)
    hi = jax.lax.Precision.HIGHEST

    def shifted(t):
        z = jnp.zeros_like(t[:, :1])
        return (jnp.concatenate([z, t[:, :-1]], axis=1),
                jnp.concatenate([t[:, 1:], z], axis=1))

    def conv3(t, w, b):
        tp, tn = shifted(t)
        t3 = jnp.concatenate([tp, t, tn], axis=-1)
        return jnp.einsum("bsc,cd->bsd", t3, w, precision=hi) + b

    def res_cell(t, wi, scale):
        h = jax.nn.relu(conv3(t, params["w3"][wi], params["b3"][wi]))
        h = conv3(h, params["w3"][wi + 1], params["b3"][wi + 1])
        return t + scale * h

    def ir_cell(t, i):
        h = jax.nn.relu(jnp.einsum("bsc,cd->bsd", t, params["we"][i],
                                   precision=hi) + params["be"][i])
        hp, hn = shifted(h)
        wd = params["wd"][i]
        h = jax.nn.relu(hp * wd[0] + h * wd[1] + hn * wd[2] + params["bd"][i])
        h = jnp.einsum("bsc,cd->bsd", h, params["wp"][i],
                       precision=hi) + params["bp"][i]
        return t + h

    def latent(t, zi, e):
        y = conv3(t, params["wz"][zi], params["bz"][zi])
        mu, lv = y[..., :C], y[..., C:]
        return mu + e * jnp.exp(0.5 * lv), mu, lv

    x0 = conv3(x, params["w3"][0], params["b3"][0])
    res1 = res_cell(x0, 1, 1.0)
    res2 = res_cell(res1, 3, 1.0)
    res3 = res_cell(res2, 5, params["scale"])
    z1, mu1, lv1 = latent(res3, 0, eps[..., 0:C])
    ir1 = ir_cell(z1 + params["h"], 0)
    z2, mu2, lv2 = latent(res2 + ir1, 1, eps[..., C:2 * C])
    ir2 = ir_cell(ir1 + z2, 1)
    z3, mu3, lv3 = latent(res1 + ir2, 2, eps[..., 2 * C:3 * C])
    return {"z1": z1, "mu_z1": mu1, "logvar_z1": lv1,
            "z2": z2, "mu_z2": mu2, "logvar_z2": lv2,
            "z3": z3, "mu_z3": mu3, "logvar_z3": lv3, "res3_out": res3}


# ----------------------------------------------------------------------------
if __name__ == "__main__":
    key = jax.random.PRNGKey(0)
    k_x, k_p, k_eps = jax.random.split(key, 3)

    B, S, C = 2, 8, 32                  # batch, num_segments, embedding_size
    byte_res3_out = jax.random.normal(k_x, (B, S, C), jnp.float32)
    params = init_params(k_p, C)

    fwd = jax.jit(segment_hierarchy_encoder, static_argnames=("torch_layout",))

    # channels-last (lane-dense) path + numerical check vs pure-JAX reference
    out = fwd(params, byte_res3_out, k_eps)
    jax.block_until_ready(out)
    ref = reference_forward(params, byte_res3_out, k_eps)
    for name in _OUT_NAMES:
        a, r = out[name], ref[name]
        assert a.shape == (B, S, C), name
        assert bool(jnp.all(jnp.isfinite(a))), name
        assert bool(jnp.allclose(a, r, rtol=3e-2, atol=3e-2)), (
            name, float(jnp.max(jnp.abs(a - r))))

    # optional PyTorch-compatible (B, C, S) layout
    out_t = fwd(params, byte_res3_out, k_eps, torch_layout=True)
    jax.block_until_ready(out_t)
    assert out_t["z1"].shape == (B, C, S)
    assert out_t["res3_out"].shape == (B, C, S)

    print("KERNEL_OK")
</pallas_src>

<mosaic_0001>
module attributes {stable_mosaic.version = 11 : i64} {
  func.func @_encoder_kernel(%arg0: i32, %arg1: memref<1x8x32xf32, #tpu.memory_space<vmem>>, %arg2: memref<1x8x96xf32, #tpu.memory_space<vmem>>, %arg3: memref<7x96x32xf32, #tpu.memory_space<vmem>>, %arg4: memref<7x1x32xf32, #tpu.memory_space<vmem>>, %arg5: memref<1x32xf32, #tpu.memory_space<vmem>>, %arg6: memref<3x96x64xf32, #tpu.memory_space<vmem>>, %arg7: memref<3x1x64xf32, #tpu.memory_space<vmem>>, %arg8: memref<2x32x64xf32, #tpu.memory_space<vmem>>, %arg9: memref<2x1x64xf32, #tpu.memory_space<vmem>>, %arg10: memref<2x3x64xf32, #tpu.memory_space<vmem>>, %arg11: memref<2x1x64xf32, #tpu.memory_space<vmem>>, %arg12: memref<2x64x32xf32, #tpu.memory_space<vmem>>, %arg13: memref<2x1x32xf32, #tpu.memory_space<vmem>>, %arg14: memref<1x32xf32, #tpu.memory_space<vmem>>, %arg15: memref<1x8x320xf32, #tpu.memory_space<vmem>>) attributes {dimension_semantics = [#tpu.dimension_semantics<parallel>], iteration_bounds = array<i64: 2>, scalar_prefetch = 0 : i64, scratch_operands = 0 : i64, tpu.core_type = #tpu.core_type<tc>, window_params = [{transform_indices = @transform_0, window_bounds = array<i64: 1, 8, 32>}, {transform_indices = @transform_1, window_bounds = array<i64: 1, 8, 96>}, {pipeline_mode = #tpu.pipeline_mode<synchronous>, transform_indices = @transform_2, window_bounds = array<i64: 7, 96, 32>}, {pipeline_mode = #tpu.pipeline_mode<synchronous>, transform_indices = @transform_3, window_bounds = array<i64: 7, 1, 32>}, {pipeline_mode = #tpu.pipeline_mode<synchronous>, transform_indices = @transform_4, window_bounds = array<i64: 1, 32>}, {pipeline_mode = #tpu.pipeline_mode<synchronous>, transform_indices = @transform_5, window_bounds = array<i64: 3, 96, 64>}, {pipeline_mode = #tpu.pipeline_mode<synchronous>, transform_indices = @transform_6, window_bounds = array<i64: 3, 1, 64>}, {pipeline_mode = #tpu.pipeline_mode<synchronous>, transform_indices = @transform_7, window_bounds = array<i64: 2, 32, 64>}, {pipeline_mode = #tpu.pipeline_mode<synchronous>, transform_indices = @transform_8, window_bounds = array<i64: 2, 1, 64>}, {pipeline_mode = #tpu.pipeline_mode<synchronous>, transform_indices = @transform_9, window_bounds = array<i64: 2, 3, 64>}, {pipeline_mode = #tpu.pipeline_mode<synchronous>, transform_indices = @transform_10, window_bounds = array<i64: 2, 1, 64>}, {pipeline_mode = #tpu.pipeline_mode<synchronous>, transform_indices = @transform_11, window_bounds = array<i64: 2, 64, 32>}, {pipeline_mode = #tpu.pipeline_mode<synchronous>, transform_indices = @transform_12, window_bounds = array<i64: 2, 1, 32>}, {pipeline_mode = #tpu.pipeline_mode<synchronous>, transform_indices = @transform_13, window_bounds = array<i64: 1, 32>}, {transform_indices = @transform_14, window_bounds = array<i64: 1, 8, 320>}]} {
    %0 = tpu.iota {dimensions = array<i32: 0>} : vector<8x1xi32>
    %c0 = arith.constant 0 : index
    %c0_0 = arith.constant 0 : index
    %c0_1 = arith.constant 0 : index
    %1 = vector.load %arg1[%c0, %c0_0, %c0_1] : memref<1x8x32xf32, #tpu.memory_space<vmem>>, vector<1x8x32xf32>
    %2 = vector.shape_cast %1 : vector<1x8x32xf32> to vector<8x32xf32>
    %c0_2 = arith.constant 0 : index
    %c0_3 = arith.constant 0 : index
    %c0_4 = arith.constant 0 : index
    %3 = vector.load %arg2[%c0_2, %c0_3, %c0_4] : memref<1x8x96xf32, #tpu.memory_space<vmem>>, vector<1x8x96xf32>
    %4 = vector.shape_cast %3 : vector<1x8x96xf32> to vector<8x96xf32>
    %c0_5 = arith.constant 0 : index
    %c0_6 = arith.constant 0 : index
    %c0_7 = arith.constant 0 : index
    %5 = vector.load %arg3[%c0_5, %c0_6, %c0_7] : memref<7x96x32xf32, #tpu.memory_space<vmem>>, vector<1x96x32xf32>
    %6 = vector.shape_cast %5 : vector<1x96x32xf32> to vector<96x32xf32>
    %c0_8 = arith.constant 0 : index
    %c0_9 = arith.constant 0 : index
    %c0_10 = arith.constant 0 : index
    %7 = vector.load %arg4[%c0_8, %c0_9, %c0_10] : memref<7x1x32xf32, #tpu.memory_space<vmem>>, vector<1x1x32xf32>
    %8 = vector.shape_cast %7 : vector<1x1x32xf32> to vector<1x32xf32>
    %c0_i32 = arith.constant 0 : i32
    %9 = vector.broadcast %c0_i32 : i32 to vector<8x1xi32>
    %10 = arith.cmpi eq, %0, %9 : vector<8x1xi32>
    %c1_i32 = arith.constant 1 : i32
    %11 = tpu.dynamic_rotate %2 by %c1_i32 dim 0 : vector<8x32xf32>, i32 -> vector<8x32xf32>
    %cst = arith.constant 0.000000e+00 : f32
    %12 = vector.shape_cast %10 : vector<8x1xi1> to vector<8x1xi1>
    %13 = vector.broadcast %12 : vector<8x1xi1> to vector<8x32xi1>
    %14 = vector.broadcast %cst : f32 to vector<8x32xf32>
    %15 = arith.select %13, %14, %11 : vector<8x32xi1>, vector<8x32xf32>
    %c7_i32 = arith.constant 7 : i32
    %16 = vector.broadcast %c7_i32 : i32 to vector<8x1xi32>
    %17 = arith.cmpi eq, %0, %16 : vector<8x1xi32>
    %c7_i32_11 = arith.constant 7 : i32
    %18 = tpu.dynamic_rotate %2 by %c7_i32_11 dim 0 : vector<8x32xf32>, i32 -> vector<8x32xf32>
    %cst_12 = arith.constant 0.000000e+00 : f32
    %19 = vector.shape_cast %17 : vector<8x1xi1> to vector<8x1xi1>
    %20 = vector.broadcast %19 : vector<8x1xi1> to vector<8x32xi1>
    %21 = vector.broadcast %cst_12 : f32 to vector<8x32xf32>
    %22 = arith.select %20, %21, %18 : vector<8x32xi1>, vector<8x32xf32>
    %23 = tpu.concatenate %15, %2, %22 in 1 : vector<8x32xf32>, vector<8x32xf32>, vector<8x32xf32> -> vector<8x96xf32>
    %cst_13 = arith.constant dense<0.000000e+00> : vector<8x32xf32>
    %24 = tpu.matmul %23, %6, %cst_13 {dimension_numbers = #tpu.dot_dimension_numbers<[1], [0], [0], [1], [0, 0, 1, 1], [], []>} : vector<8x96xf32>, vector<96x32xf32>, vector<8x32xf32> -> vector<8x32xf32>
    %25 = vector.broadcast %8 : vector<1x32xf32> to vector<8x32xf32>
    %26 = arith.addf %24, %25 : vector<8x32xf32>
    %c1 = arith.constant 1 : index
    %c0_14 = arith.constant 0 : index
    %c0_15 = arith.constant 0 : index
    %27 = vector.load %arg3[%c1, %c0_14, %c0_15] : memref<7x96x32xf32, #tpu.memory_space<vmem>>, vector<1x96x32xf32>
    %28 = vector.shape_cast %27 : vector<1x96x32xf32> to vector<96x32xf32>
    %c1_16 = arith.constant 1 : index
    %c0_17 = arith.constant 0 : index
    %c0_18 = arith.constant 0 : index
    %29 = vector.load %arg4[%c1_16, %c0_17, %c0_18] : memref<7x1x32xf32, #tpu.memory_space<vmem>>, vector<1x1x32xf32>
    %30 = vector.shape_cast %29 : vector<1x1x32xf32> to vector<1x32xf32>
    %c0_i32_19 = arith.constant 0 : i32
    %31 = vector.broadcast %c0_i32_19 : i32 to vector<8x1xi32>
    %32 = arith.cmpi eq, %0, %31 : vector<8x1xi32>
    %c1_i32_20 = arith.constant 1 : i32
    %33 = tpu.dynamic_rotate %26 by %c1_i32_20 dim 0 : vector<8x32xf32>, i32 -> vector<8x32xf32>
    %cst_21 = arith.constant 0.000000e+00 : f32
    %34 = vector.shape_cast %32 : vector<8x1xi1> to vector<8x1xi1>
    %35 = vector.broadcast %34 : vector<8x1xi1> to vector<8x32xi1>
    %36 = vector.broadcast %cst_21 : f32 to vector<8x32xf32>
    %37 = arith.select %35, %36, %33 : vector<8x32xi1>, vector<8x32xf32>
    %c7_i32_22 = arith.constant 7 : i32
    %38 = vector.broadcast %c7_i32_22 : i32 to vector<8x1xi32>
    %39 = arith.cmpi eq, %0, %38 : vector<8x1xi32>
    %c7_i32_23 = arith.constant 7 : i32
    %40 = tpu.dynamic_rotate %26 by %c7_i32_23 dim 0 : vector<8x32xf32>, i32 -> vector<8x32xf32>
    %cst_24 = arith.constant 0.000000e+00 : f32
    %41 = vector.shape_cast %39 : vector<8x1xi1> to vector<8x1xi1>
    %42 = vector.broadcast %41 : vector<8x1xi1> to vector<8x32xi1>
    %43 = vector.broadcast %cst_24 : f32 to vector<8x32xf32>
    %44 = arith.select %42, %43, %40 : vector<8x32xi1>, vector<8x32xf32>
    %45 = tpu.concatenate %37, %26, %44 in 1 : vector<8x32xf32>, vector<8x32xf32>, vector<8x32xf32> -> vector<8x96xf32>
    %cst_25 = arith.constant dense<0.000000e+00> : vector<8x32xf32>
    %46 = tpu.matmul %45, %28, %cst_25 {dimension_numbers = #tpu.dot_dimension_numbers<[1], [0], [0], [1], [0, 0, 1, 1], [], []>} : vector<8x96xf32>, vector<96x32xf32>, vector<8x32xf32> -> vector<8x32xf32>
    %47 = vector.broadcast %30 : vector<1x32xf32> to vector<8x32xf32>
    %48 = arith.addf %46, %47 : vector<8x32xf32>
    %cst_26 = arith.constant 0.000000e+00 : f32
    %49 = vector.broadcast %cst_26 : f32 to vector<8x32xf32>
    %50 = arith.maximumf %48, %49 : vector<8x32xf32>
    %c2 = arith.constant 2 : index
    %c0_27 = arith.constant 0 : index
    %c0_28 = arith.constant 0 : index
    %51 = vector.load %arg3[%c2, %c0_27, %c0_28] : memref<7x96x32xf32, #tpu.memory_space<vmem>>, vector<1x96x32xf32>
    %52 = vector.shape_cast %51 : vector<1x96x32xf32> to vector<96x32xf32>
    %c2_29 = arith.constant 2 : index
    %c0_30 = arith.constant 0 : index
    %c0_31 = arith.constant 0 : index
    %53 = vector.load %arg4[%c2_29, %c0_30, %c0_31] : memref<7x1x32xf32, #tpu.memory_space<vmem>>, vector<1x1x32xf32>
    %54 = vector.shape_cast %53 : vector<1x1x32xf32> to vector<1x32xf32>
    %c0_i32_32 = arith.constant 0 : i32
    %55 = vector.broadcast %c0_i32_32 : i32 to vector<8x1xi32>
    %56 = arith.cmpi eq, %0, %55 : vector<8x1xi32>
    %c1_i32_33 = arith.constant 1 : i32
    %57 = tpu.dynamic_rotate %50 by %c1_i32_33 dim 0 : vector<8x32xf32>, i32 -> vector<8x32xf32>
    %cst_34 = arith.constant 0.000000e+00 : f32
    %58 = vector.shape_cast %56 : vector<8x1xi1> to vector<8x1xi1>
    %59 = vector.broadcast %58 : vector<8x1xi1> to vector<8x32xi1>
    %60 = vector.broadcast %cst_34 : f32 to vector<8x32xf32>
    %61 = arith.select %59, %60, %57 : vector<8x32xi1>, vector<8x32xf32>
    %c7_i32_35 = arith.constant 7 : i32
    %62 = vector.broadcast %c7_i32_35 : i32 to vector<8x1xi32>
    %63 = arith.cmpi eq, %0, %62 : vector<8x1xi32>
    %c7_i32_36 = arith.constant 7 : i32
    %64 = tpu.dynamic_rotate %50 by %c7_i32_36 dim 0 : vector<8x32xf32>, i32 -> vector<8x32xf32>
    %cst_37 = arith.constant 0.000000e+00 : f32
    %65 = vector.shape_cast %63 : vector<8x1xi1> to vector<8x1xi1>
    %66 = vector.broadcast %65 : vector<8x1xi1> to vector<8x32xi1>
    %67 = vector.broadcast %cst_37 : f32 to vector<8x32xf32>
    %68 = arith.select %66, %67, %64 : vector<8x32xi1>, vector<8x32xf32>
    %69 = tpu.concatenate %61, %50, %68 in 1 : vector<8x32xf32>, vector<8x32xf32>, vector<8x32xf32> -> vector<8x96xf32>
    %cst_38 = arith.constant dense<0.000000e+00> : vector<8x32xf32>
    %70 = tpu.matmul %69, %52, %cst_38 {dimension_numbers = #tpu.dot_dimension_numbers<[1], [0], [0], [1], [0, 0, 1, 1], [], []>} : vector<8x96xf32>, vector<96x32xf32>, vector<8x32xf32> -> vector<8x32xf32>
    %71 = vector.broadcast %54 : vector<1x32xf32> to vector<8x32xf32>
    %72 = arith.addf %70, %71 : vector<8x32xf32>
    %cst_39 = arith.constant 1.000000e+00 : f32
    %73 = vector.broadcast %cst_39 : f32 to vector<8x32xf32>
    %74 = arith.mulf %73, %72 : vector<8x32xf32>
    %75 = arith.addf %26, %74 : vector<8x32xf32>
    %c3 = arith.constant 3 : index
    %c0_40 = arith.constant 0 : index
    %c0_41 = arith.constant 0 : index
    %76 = vector.load %arg3[%c3, %c0_40, %c0_41] : memref<7x96x32xf32, #tpu.memory_space<vmem>>, vector<1x96x32xf32>
    %77 = vector.shape_cast %76 : vector<1x96x32xf32> to vector<96x32xf32>
    %c3_42 = arith.constant 3 : index
    %c0_43 = arith.constant 0 : index
    %c0_44 = arith.constant 0 : index
    %78 = vector.load %arg4[%c3_42, %c0_43, %c0_44] : memref<7x1x32xf32, #tpu.memory_space<vmem>>, vector<1x1x32xf32>
    %79 = vector.shape_cast %78 : vector<1x1x32xf32> to vector<1x32xf32>
    %c0_i32_45 = arith.constant 0 : i32
    %80 = vector.broadcast %c0_i32_45 : i32 to vector<8x1xi32>
    %81 = arith.cmpi eq, %0, %80 : vector<8x1xi32>
    %c1_i32_46 = arith.constant 1 : i32
    %82 = tpu.dynamic_rotate %75 by %c1_i32_46 dim 0 : vector<8x32xf32>, i32 -> vector<8x32xf32>
    %cst_47 = arith.constant 0.000000e+00 : f32
    %83 = vector.shape_cast %81 : vector<8x1xi1> to vector<8x1xi1>
    %84 = vector.broadcast %83 : vector<8x1xi1> to vector<8x32xi1>
    %85 = vector.broadcast %cst_47 : f32 to vector<8x32xf32>
    %86 = arith.select %84, %85, %82 : vector<8x32xi1>, vector<8x32xf32>
    %c7_i32_48 = arith.constant 7 : i32
    %87 = vector.broadcast %c7_i32_48 : i32 to vector<8x1xi32>
    %88 = arith.cmpi eq, %0, %87 : vector<8x1xi32>
    %c7_i32_49 = arith.constant 7 : i32
    %89 = tpu.dynamic_rotate %75 by %c7_i32_49 dim 0 : vector<8x32xf32>, i32 -> vector<8x32xf32>
    %cst_50 = arith.constant 0.000000e+00 : f32
    %90 = vector.shape_cast %88 : vector<8x1xi1> to vector<8x1xi1>
    %91 = vector.broadcast %90 : vector<8x1xi1> to vector<8x32xi1>
    %92 = vector.broadcast %cst_50 : f32 to vector<8x32xf32>
    %93 = arith.select %91, %92, %89 : vector<8x32xi1>, vector<8x32xf32>
    %94 = tpu.concatenate %86, %75, %93 in 1 : vector<8x32xf32>, vector<8x32xf32>, vector<8x32xf32> -> vector<8x96xf32>
    %cst_51 = arith.constant dense<0.000000e+00> : vector<8x32xf32>
    %95 = tpu.matmul %94, %77, %cst_51 {dimension_numbers = #tpu.dot_dimension_numbers<[1], [0], [0], [1], [0, 0, 1, 1], [], []>} : vector<8x96xf32>, vector<96x32xf32>, vector<8x32xf32> -> vector<8x32xf32>
    %96 = vector.broadcast %79 : vector<1x32xf32> to vector<8x32xf32>
    %97 = arith.addf %95, %96 : vector<8x32xf32>
    %cst_52 = arith.constant 0.000000e+00 : f32
    %98 = vector.broadcast %cst_52 : f32 to vector<8x32xf32>
    %99 = arith.maximumf %97, %98 : vector<8x32xf32>
    %c4 = arith.constant 4 : index
    %c0_53 = arith.constant 0 : index
    %c0_54 = arith.constant 0 : index
    %100 = vector.load %arg3[%c4, %c0_53, %c0_54] : memref<7x96x32xf32, #tpu.memory_space<vmem>>, vector<1x96x32xf32>
    %101 = vector.shape_cast %100 : vector<1x96x32xf32> to vector<96x32xf32>
    %c4_55 = arith.constant 4 : index
    %c0_56 = arith.constant 0 : index
    %c0_57 = arith.constant 0 : index
    %102 = vector.load %arg4[%c4_55, %c0_56, %c0_57] : memref<7x1x32xf32, #tpu.memory_space<vmem>>, vector<1x1x32xf32>
    %103 = vector.shape_cast %102 : vector<1x1x32xf32> to vector<1x32xf32>
    %c0_i32_58 = arith.constant 0 : i32
    %104 = vector.broadcast %c0_i32_58 : i32 to vector<8x1xi32>
    %105 = arith.cmpi eq, %0, %104 : vector<8x1xi32>
    %c1_i32_59 = arith.constant 1 : i32
    %106 = tpu.dynamic_rotate %99 by %c1_i32_59 dim 0 : vector<8x32xf32>, i32 -> vector<8x32xf32>
    %cst_60 = arith.constant 0.000000e+00 : f32
    %107 = vector.shape_cast %105 : vector<8x1xi1> to vector<8x1xi1>
    %108 = vector.broadcast %107 : vector<8x1xi1> to vector<8x32xi1>
    %109 = vector.broadcast %cst_60 : f32 to vector<8x32xf32>
    %110 = arith.select %108, %109, %106 : vector<8x32xi1>, vector<8x32xf32>
    %c7_i32_61 = arith.constant 7 : i32
    %111 = vector.broadcast %c7_i32_61 : i32 to vector<8x1xi32>
    %112 = arith.cmpi eq, %0, %111 : vector<8x1xi32>
    %c7_i32_62 = arith.constant 7 : i32
    %113 = tpu.dynamic_rotate %99 by %c7_i32_62 dim 0 : vector<8x32xf32>, i32 -> vector<8x32xf32>
    %cst_63 = arith.constant 0.000000e+00 : f32
    %114 = vector.shape_cast %112 : vector<8x1xi1> to vector<8x1xi1>
    %115 = vector.broadcast %114 : vector<8x1xi1> to vector<8x32xi1>
    %116 = vector.broadcast %cst_63 : f32 to vector<8x32xf32>
    %117 = arith.select %115, %116, %113 : vector<8x32xi1>, vector<8x32xf32>
    %118 = tpu.concatenate %110, %99, %117 in 1 : vector<8x32xf32>, vector<8x32xf32>, vector<8x32xf32> -> vector<8x96xf32>
    %cst_64 = arith.constant dense<0.000000e+00> : vector<8x32xf32>
    %119 = tpu.matmul %118, %101, %cst_64 {dimension_numbers = #tpu.dot_dimension_numbers<[1], [0], [0], [1], [0, 0, 1, 1], [], []>} : vector<8x96xf32>, vector<96x32xf32>, vector<8x32xf32> -> vector<8x32xf32>
    %120 = vector.broadcast %103 : vector<1x32xf32> to vector<8x32xf32>
    %121 = arith.addf %119, %120 : vector<8x32xf32>
    %cst_65 = arith.constant 1.000000e+00 : f32
    %122 = vector.broadcast %cst_65 : f32 to vector<8x32xf32>
    %123 = arith.mulf %122, %121 : vector<8x32xf32>
    %124 = arith.addf %75, %123 : vector<8x32xf32>
    %c0_66 = arith.constant 0 : index
    %c0_67 = arith.constant 0 : index
    %125 = vector.load %arg5[%c0_66, %c0_67] : memref<1x32xf32, #tpu.memory_space<vmem>>, vector<1x32xf32>
    %c5 = arith.constant 5 : index
    %c0_68 = arith.constant 0 : index
    %c0_69 = arith.constant 0 : index
    %126 = vector.load %arg3[%c5, %c0_68, %c0_69] : memref<7x96x32xf32, #tpu.memory_space<vmem>>, vector<1x96x32xf32>
    %127 = vector.shape_cast %126 : vector<1x96x32xf32> to vector<96x32xf32>
    %c5_70 = arith.constant 5 : index
    %c0_71 = arith.constant 0 : index
    %c0_72 = arith.constant 0 : index
    %128 = vector.load %arg4[%c5_70, %c0_71, %c0_72] : memref<7x1x32xf32, #tpu.memory_space<vmem>>, vector<1x1x32xf32>
    %129 = vector.shape_cast %128 : vector<1x1x32xf32> to vector<1x32xf32>
    %c0_i32_73 = arith.constant 0 : i32
    %130 = vector.broadcast %c0_i32_73 : i32 to vector<8x1xi32>
    %131 = arith.cmpi eq, %0, %130 : vector<8x1xi32>
    %c1_i32_74 = arith.constant 1 : i32
    %132 = tpu.dynamic_rotate %124 by %c1_i32_74 dim 0 : vector<8x32xf32>, i32 -> vector<8x32xf32>
    %cst_75 = arith.constant 0.000000e+00 : f32
    %133 = vector.shape_cast %131 : vector<8x1xi1> to vector<8x1xi1>
    %134 = vector.broadcast %133 : vector<8x1xi1> to vector<8x32xi1>
    %135 = vector.broadcast %cst_75 : f32 to vector<8x32xf32>
    %136 = arith.select %134, %135, %132 : vector<8x32xi1>, vector<8x32xf32>
    %c7_i32_76 = arith.constant 7 : i32
    %137 = vector.broadcast %c7_i32_76 : i32 to vector<8x1xi32>
    %138 = arith.cmpi eq, %0, %137 : vector<8x1xi32>
    %c7_i32_77 = arith.constant 7 : i32
    %139 = tpu.dynamic_rotate %124 by %c7_i32_77 dim 0 : vector<8x32xf32>, i32 -> vector<8x32xf32>
    %cst_78 = arith.constant 0.000000e+00 : f32
    %140 = vector.shape_cast %138 : vector<8x1xi1> to vector<8x1xi1>
    %141 = vector.broadcast %140 : vector<8x1xi1> to vector<8x32xi1>
    %142 = vector.broadcast %cst_78 : f32 to vector<8x32xf32>
    %143 = arith.select %141, %142, %139 : vector<8x32xi1>, vector<8x32xf32>
    %144 = tpu.concatenate %136, %124, %143 in 1 : vector<8x32xf32>, vector<8x32xf32>, vector<8x32xf32> -> vector<8x96xf32>
    %cst_79 = arith.constant dense<0.000000e+00> : vector<8x32xf32>
    %145 = tpu.matmul %144, %127, %cst_79 {dimension_numbers = #tpu.dot_dimension_numbers<[1], [0], [0], [1], [0, 0, 1, 1], [], []>} : vector<8x96xf32>, vector<96x32xf32>, vector<8x32xf32> -> vector<8x32xf32>
    %146 = vector.broadcast %129 : vector<1x32xf32> to vector<8x32xf32>
    %147 = arith.addf %145, %146 : vector<8x32xf32>
    %cst_80 = arith.constant 0.000000e+00 : f32
    %148 = vector.broadcast %cst_80 : f32 to vector<8x32xf32>
    %149 = arith.maximumf %147, %148 : vector<8x32xf32>
    %c6 = arith.constant 6 : index
    %c0_81 = arith.constant 0 : index
    %c0_82 = arith.constant 0 : index
    %150 = vector.load %arg3[%c6, %c0_81, %c0_82] : memref<7x96x32xf32, #tpu.memory_space<vmem>>, vector<1x96x32xf32>
    %151 = vector.shape_cast %150 : vector<1x96x32xf32> to vector<96x32xf32>
    %c6_83 = arith.constant 6 : index
    %c0_84 = arith.constant 0 : index
    %c0_85 = arith.constant 0 : index
    %152 = vector.load %arg4[%c6_83, %c0_84, %c0_85] : memref<7x1x32xf32, #tpu.memory_space<vmem>>, vector<1x1x32xf32>
    %153 = vector.shape_cast %152 : vector<1x1x32xf32> to vector<1x32xf32>
    %c0_i32_86 = arith.constant 0 : i32
    %154 = vector.broadcast %c0_i32_86 : i32 to vector<8x1xi32>
    %155 = arith.cmpi eq, %0, %154 : vector<8x1xi32>
    %c1_i32_87 = arith.constant 1 : i32
    %156 = tpu.dynamic_rotate %149 by %c1_i32_87 dim 0 : vector<8x32xf32>, i32 -> vector<8x32xf32>
    %cst_88 = arith.constant 0.000000e+00 : f32
    %157 = vector.shape_cast %155 : vector<8x1xi1> to vector<8x1xi1>
    %158 = vector.broadcast %157 : vector<8x1xi1> to vector<8x32xi1>
    %159 = vector.broadcast %cst_88 : f32 to vector<8x32xf32>
    %160 = arith.select %158, %159, %156 : vector<8x32xi1>, vector<8x32xf32>
    %c7_i32_89 = arith.constant 7 : i32
    %161 = vector.broadcast %c7_i32_89 : i32 to vector<8x1xi32>
    %162 = arith.cmpi eq, %0, %161 : vector<8x1xi32>
    %c7_i32_90 = arith.constant 7 : i32
    %163 = tpu.dynamic_rotate %149 by %c7_i32_90 dim 0 : vector<8x32xf32>, i32 -> vector<8x32xf32>
    %cst_91 = arith.constant 0.000000e+00 : f32
    %164 = vector.shape_cast %162 : vector<8x1xi1> to vector<8x1xi1>
    %165 = vector.broadcast %164 : vector<8x1xi1> to vector<8x32xi1>
    %166 = vector.broadcast %cst_91 : f32 to vector<8x32xf32>
    %167 = arith.select %165, %166, %163 : vector<8x32xi1>, vector<8x32xf32>
    %168 = tpu.concatenate %160, %149, %167 in 1 : vector<8x32xf32>, vector<8x32xf32>, vector<8x32xf32> -> vector<8x96xf32>
    %cst_92 = arith.constant dense<0.000000e+00> : vector<8x32xf32>
    %169 = tpu.matmul %168, %151, %cst_92 {dimension_numbers = #tpu.dot_dimension_numbers<[1], [0], [0], [1], [0, 0, 1, 1], [], []>} : vector<8x96xf32>, vector<96x32xf32>, vector<8x32xf32> -> vector<8x32xf32>
    %170 = vector.broadcast %153 : vector<1x32xf32> to vector<8x32xf32>
    %171 = arith.addf %169, %170 : vector<8x32xf32>
    %172 = vector.broadcast %125 : vector<1x32xf32> to vector<8x32xf32>
    %173 = arith.mulf %172, %171 : vector<8x32xf32>
    %174 = arith.addf %124, %173 : vector<8x32xf32>
    %175 = vector.extract_strided_slice %4 {offsets = [0, 0], sizes = [8, 32], strides = [1, 1]} : vector<8x96xf32> to vector<8x32xf32>
    %c0_93 = arith.constant 0 : index
    %c0_94 = arith.constant 0 : index
    %c0_95 = arith.constant 0 : index
    %176 = vector.load %arg6[%c0_93, %c0_94, %c0_95] : memref<3x96x64xf32, #tpu.memory_space<vmem>>, vector<1x96x64xf32>
    %177 = vector.shape_cast %176 : vector<1x96x64xf32> to vector<96x64xf32>
    %c0_96 = arith.constant 0 : index
    %c0_97 = arith.constant 0 : index
    %c0_98 = arith.constant 0 : index
    %178 = vector.load %arg7[%c0_96, %c0_97, %c0_98] : memref<3x1x64xf32, #tpu.memory_space<vmem>>, vector<1x1x64xf32>
    %179 = vector.shape_cast %178 : vector<1x1x64xf32> to vector<1x64xf32>
    %c0_i32_99 = arith.constant 0 : i32
    %180 = vector.broadcast %c0_i32_99 : i32 to vector<8x1xi32>
    %181 = arith.cmpi eq, %0, %180 : vector<8x1xi32>
    %c1_i32_100 = arith.constant 1 : i32
    %182 = tpu.dynamic_rotate %174 by %c1_i32_100 dim 0 : vector<8x32xf32>, i32 -> vector<8x32xf32>
    %cst_101 = arith.constant 0.000000e+00 : f32
    %183 = vector.shape_cast %181 : vector<8x1xi1> to vector<8x1xi1>
    %184 = vector.broadcast %183 : vector<8x1xi1> to vector<8x32xi1>
    %185 = vector.broadcast %cst_101 : f32 to vector<8x32xf32>
    %186 = arith.select %184, %185, %182 : vector<8x32xi1>, vector<8x32xf32>
    %c7_i32_102 = arith.constant 7 : i32
    %187 = vector.broadcast %c7_i32_102 : i32 to vector<8x1xi32>
    %188 = arith.cmpi eq, %0, %187 : vector<8x1xi32>
    %c7_i32_103 = arith.constant 7 : i32
    %189 = tpu.dynamic_rotate %174 by %c7_i32_103 dim 0 : vector<8x32xf32>, i32 -> vector<8x32xf32>
    %cst_104 = arith.constant 0.000000e+00 : f32
    %190 = vector.shape_cast %188 : vector<8x1xi1> to vector<8x1xi1>
    %191 = vector.broadcast %190 : vector<8x1xi1> to vector<8x32xi1>
    %192 = vector.broadcast %cst_104 : f32 to vector<8x32xf32>
    %193 = arith.select %191, %192, %189 : vector<8x32xi1>, vector<8x32xf32>
    %194 = tpu.concatenate %186, %174, %193 in 1 : vector<8x32xf32>, vector<8x32xf32>, vector<8x32xf32> -> vector<8x96xf32>
    %cst_105 = arith.constant dense<0.000000e+00> : vector<8x64xf32>
    %195 = tpu.matmul %194, %177, %cst_105 {dimension_numbers = #tpu.dot_dimension_numbers<[1], [0], [0], [1], [0, 0, 1, 1], [], []>} : vector<8x96xf32>, vector<96x64xf32>, vector<8x64xf32> -> vector<8x64xf32>
    %196 = vector.broadcast %179 : vector<1x64xf32> to vector<8x64xf32>
    %197 = arith.addf %195, %196 : vector<8x64xf32>
    %198 = vector.extract_strided_slice %197 {offsets = [0, 0], sizes = [8, 32], strides = [1, 1]} : vector<8x64xf32> to vector<8x32xf32>
    %199 = vector.extract_strided_slice %197 {offsets = [0, 32], sizes = [8, 32], strides = [1, 1]} : vector<8x64xf32> to vector<8x32xf32>
    %cst_106 = arith.constant 5.000000e-01 : f32
    %200 = vector.broadcast %cst_106 : f32 to vector<8x32xf32>
    %201 = arith.mulf %200, %199 : vector<8x32xf32>
    %202 = math.exp %201 : vector<8x32xf32>
    %203 = arith.mulf %175, %202 : vector<8x32xf32>
    %204 = arith.addf %198, %203 : vector<8x32xf32>
    %c0_107 = arith.constant 0 : index
    %c0_108 = arith.constant 0 : index
    %205 = vector.load %arg14[%c0_107, %c0_108] : memref<1x32xf32, #tpu.memory_space<vmem>>, vector<1x32xf32>
    %206 = vector.broadcast %205 : vector<1x32xf32> to vector<8x32xf32>
    %207 = arith.addf %204, %206 : vector<8x32xf32>
    %c0_109 = arith.constant 0 : index
    %c0_110 = arith.constant 0 : index
    %c0_111 = arith.constant 0 : index
    %208 = vector.load %arg8[%c0_109, %c0_110, %c0_111] : memref<2x32x64xf32, #tpu.memory_space<vmem>>, vector<1x32x64xf32>
    %209 = vector.shape_cast %208 : vector<1x32x64xf32> to vector<32x64xf32>
    %cst_112 = arith.constant dense<0.000000e+00> : vector<8x64xf32>
    %210 = tpu.matmul %207, %209, %cst_112 {dimension_numbers = #tpu.dot_dimension_numbers<[1], [0], [0], [1], [0, 0, 1, 1], [], []>} : vector<8x32xf32>, vector<32x64xf32>, vector<8x64xf32> -> vector<8x64xf32>
    %c0_113 = arith.constant 0 : index
    %c0_114 = arith.constant 0 : index
    %c0_115 = arith.constant 0 : index
    %211 = vector.load %arg9[%c0_113, %c0_114, %c0_115] : memref<2x1x64xf32, #tpu.memory_space<vmem>>, vector<1x1x64xf32>
    %212 = vector.shape_cast %211 : vector<1x1x64xf32> to vector<1x64xf32>
    %213 = vector.broadcast %212 : vector<1x64xf32> to vector<8x64xf32>
    %214 = arith.addf %210, %213 : vector<8x64xf32>
    %cst_116 = arith.constant 0.000000e+00 : f32
    %215 = vector.broadcast %cst_116 : f32 to vector<8x64xf32>
    %216 = arith.maximumf %214, %215 : vector<8x64xf32>
    %c0_i32_117 = arith.constant 0 : i32
    %217 = vector.broadcast %c0_i32_117 : i32 to vector<8x1xi32>
    %218 = arith.cmpi eq, %0, %217 : vector<8x1xi32>
    %c1_i32_118 = arith.constant 1 : i32
    %219 = tpu.dynamic_rotate %216 by %c1_i32_118 dim 0 : vector<8x64xf32>, i32 -> vector<8x64xf32>
    %cst_119 = arith.constant 0.000000e+00 : f32
    %220 = vector.shape_cast %218 : vector<8x1xi1> to vector<8x1xi1>
    %221 = vector.broadcast %220 : vector<8x1xi1> to vector<8x64xi1>
    %222 = vector.broadcast %cst_119 : f32 to vector<8x64xf32>
    %223 = arith.select %221, %222, %219 : vector<8x64xi1>, vector<8x64xf32>
    %c7_i32_120 = arith.constant 7 : i32
    %224 = vector.broadcast %c7_i32_120 : i32 to vector<8x1xi32>
    %225 = arith.cmpi eq, %0, %224 : vector<8x1xi32>
    %c7_i32_121 = arith.constant 7 : i32
    %226 = tpu.dynamic_rotate %216 by %c7_i32_121 dim 0 : vector<8x64xf32>, i32 -> vector<8x64xf32>
    %cst_122 = arith.constant 0.000000e+00 : f32
    %227 = vector.shape_cast %225 : vector<8x1xi1> to vector<8x1xi1>
    %228 = vector.broadcast %227 : vector<8x1xi1> to vector<8x64xi1>
    %229 = vector.broadcast %cst_122 : f32 to vector<8x64xf32>
    %230 = arith.select %228, %229, %226 : vector<8x64xi1>, vector<8x64xf32>
    %c0_123 = arith.constant 0 : index
    %c0_124 = arith.constant 0 : index
    %c0_125 = arith.constant 0 : index
    %231 = vector.load %arg10[%c0_123, %c0_124, %c0_125] : memref<2x3x64xf32, #tpu.memory_space<vmem>>, vector<1x3x64xf32>
    %232 = vector.shape_cast %231 : vector<1x3x64xf32> to vector<3x64xf32>
    %233 = vector.extract_strided_slice %232 {offsets = [0, 0], sizes = [1, 64], strides = [1, 1]} : vector<3x64xf32> to vector<1x64xf32>
    %234 = vector.broadcast %233 : vector<1x64xf32> to vector<8x64xf32>
    %235 = arith.mulf %223, %234 : vector<8x64xf32>
    %236 = vector.extract_strided_slice %232 {offsets = [1, 0], sizes = [1, 64], strides = [1, 1]} : vector<3x64xf32> to vector<1x64xf32>
    %237 = vector.broadcast %236 : vector<1x64xf32> to vector<8x64xf32>
    %238 = arith.mulf %216, %237 : vector<8x64xf32>
    %239 = arith.addf %235, %238 : vector<8x64xf32>
    %240 = vector.extract_strided_slice %232 {offsets = [2, 0], sizes = [1, 64], strides = [1, 1]} : vector<3x64xf32> to vector<1x64xf32>
    %241 = vector.broadcast %240 : vector<1x64xf32> to vector<8x64xf32>
    %242 = arith.mulf %230, %241 : vector<8x64xf32>
    %243 = arith.addf %239, %242 : vector<8x64xf32>
    %c0_126 = arith.constant 0 : index
    %c0_127 = arith.constant 0 : index
    %c0_128 = arith.constant 0 : index
    %244 = vector.load %arg11[%c0_126, %c0_127, %c0_128] : memref<2x1x64xf32, #tpu.memory_space<vmem>>, vector<1x1x64xf32>
    %245 = vector.shape_cast %244 : vector<1x1x64xf32> to vector<1x64xf32>
    %246 = vector.broadcast %245 : vector<1x64xf32> to vector<8x64xf32>
    %247 = arith.addf %243, %246 : vector<8x64xf32>
    %cst_129 = arith.constant 0.000000e+00 : f32
    %248 = vector.broadcast %cst_129 : f32 to vector<8x64xf32>
    %249 = arith.maximumf %247, %248 : vector<8x64xf32>
    %c0_130 = arith.constant 0 : index
    %c0_131 = arith.constant 0 : index
    %c0_132 = arith.constant 0 : index
    %250 = vector.load %arg12[%c0_130, %c0_131, %c0_132] : memref<2x64x32xf32, #tpu.memory_space<vmem>>, vector<1x64x32xf32>
    %251 = vector.shape_cast %250 : vector<1x64x32xf32> to vector<64x32xf32>
    %cst_133 = arith.constant dense<0.000000e+00> : vector<8x32xf32>
    %252 = tpu.matmul %249, %251, %cst_133 {dimension_numbers = #tpu.dot_dimension_numbers<[1], [0], [0], [1], [0, 0, 1, 1], [], []>} : vector<8x64xf32>, vector<64x32xf32>, vector<8x32xf32> -> vector<8x32xf32>
    %c0_134 = arith.constant 0 : index
    %c0_135 = arith.constant 0 : index
    %c0_136 = arith.constant 0 : index
    %253 = vector.load %arg13[%c0_134, %c0_135, %c0_136] : memref<2x1x32xf32, #tpu.memory_space<vmem>>, vector<1x1x32xf32>
    %254 = vector.shape_cast %253 : vector<1x1x32xf32> to vector<1x32xf32>
    %255 = vector.broadcast %254 : vector<1x32xf32> to vector<8x32xf32>
    %256 = arith.addf %252, %255 : vector<8x32xf32>
    %257 = arith.addf %207, %256 : vector<8x32xf32>
    %258 = arith.addf %124, %257 : vector<8x32xf32>
    %259 = vector.extract_strided_slice %4 {offsets = [0, 32], sizes = [8, 32], strides = [1, 1]} : vector<8x96xf32> to vector<8x32xf32>
    %c1_137 = arith.constant 1 : index
    %c0_138 = arith.constant 0 : index
    %c0_139 = arith.constant 0 : index
    %260 = vector.load %arg6[%c1_137, %c0_138, %c0_139] : memref<3x96x64xf32, #tpu.memory_space<vmem>>, vector<1x96x64xf32>
    %261 = vector.shape_cast %260 : vector<1x96x64xf32> to vector<96x64xf32>
    %c1_140 = arith.constant 1 : index
    %c0_141 = arith.constant 0 : index
    %c0_142 = arith.constant 0 : index
    %262 = vector.load %arg7[%c1_140, %c0_141, %c0_142] : memref<3x1x64xf32, #tpu.memory_space<vmem>>, vector<1x1x64xf32>
    %263 = vector.shape_cast %262 : vector<1x1x64xf32> to vector<1x64xf32>
    %c0_i32_143 = arith.constant 0 : i32
    %264 = vector.broadcast %c0_i32_143 : i32 to vector<8x1xi32>
    %265 = arith.cmpi eq, %0, %264 : vector<8x1xi32>
    %c1_i32_144 = arith.constant 1 : i32
    %266 = tpu.dynamic_rotate %258 by %c1_i32_144 dim 0 : vector<8x32xf32>, i32 -> vector<8x32xf32>
    %cst_145 = arith.constant 0.000000e+00 : f32
    %267 = vector.shape_cast %265 : vector<8x1xi1> to vector<8x1xi1>
    %268 = vector.broadcast %267 : vector<8x1xi1> to vector<8x32xi1>
    %269 = vector.broadcast %cst_145 : f32 to vector<8x32xf32>
    %270 = arith.select %268, %269, %266 : vector<8x32xi1>, vector<8x32xf32>
    %c7_i32_146 = arith.constant 7 : i32
    %271 = vector.broadcast %c7_i32_146 : i32 to vector<8x1xi32>
    %272 = arith.cmpi eq, %0, %271 : vector<8x1xi32>
    %c7_i32_147 = arith.constant 7 : i32
    %273 = tpu.dynamic_rotate %258 by %c7_i32_147 dim 0 : vector<8x32xf32>, i32 -> vector<8x32xf32>
    %cst_148 = arith.constant 0.000000e+00 : f32
    %274 = vector.shape_cast %272 : vector<8x1xi1> to vector<8x1xi1>
    %275 = vector.broadcast %274 : vector<8x1xi1> to vector<8x32xi1>
    %276 = vector.broadcast %cst_148 : f32 to vector<8x32xf32>
    %277 = arith.select %275, %276, %273 : vector<8x32xi1>, vector<8x32xf32>
    %278 = tpu.concatenate %270, %258, %277 in 1 : vector<8x32xf32>, vector<8x32xf32>, vector<8x32xf32> -> vector<8x96xf32>
    %cst_149 = arith.constant dense<0.000000e+00> : vector<8x64xf32>
    %279 = tpu.matmul %278, %261, %cst_149 {dimension_numbers = #tpu.dot_dimension_numbers<[1], [0], [0], [1], [0, 0, 1, 1], [], []>} : vector<8x96xf32>, vector<96x64xf32>, vector<8x64xf32> -> vector<8x64xf32>
    %280 = vector.broadcast %263 : vector<1x64xf32> to vector<8x64xf32>
    %281 = arith.addf %279, %280 : vector<8x64xf32>
    %282 = vector.extract_strided_slice %281 {offsets = [0, 0], sizes = [8, 32], strides = [1, 1]} : vector<8x64xf32> to vector<8x32xf32>
    %283 = vector.extract_strided_slice %281 {offsets = [0, 32], sizes = [8, 32], strides = [1, 1]} : vector<8x64xf32> to vector<8x32xf32>
    %cst_150 = arith.constant 5.000000e-01 : f32
    %284 = vector.broadcast %cst_150 : f32 to vector<8x32xf32>
    %285 = arith.mulf %284, %283 : vector<8x32xf32>
    %286 = math.exp %285 : vector<8x32xf32>
    %287 = arith.mulf %259, %286 : vector<8x32xf32>
    %288 = arith.addf %282, %287 : vector<8x32xf32>
    %289 = arith.addf %257, %288 : vector<8x32xf32>
    %c1_151 = arith.constant 1 : index
    %c0_152 = arith.constant 0 : index
    %c0_153 = arith.constant 0 : index
    %290 = vector.load %arg8[%c1_151, %c0_152, %c0_153] : memref<2x32x64xf32, #tpu.memory_space<vmem>>, vector<1x32x64xf32>
    %291 = vector.shape_cast %290 : vector<1x32x64xf32> to vector<32x64xf32>
    %cst_154 = arith.constant dense<0.000000e+00> : vector<8x64xf32>
    %292 = tpu.matmul %289, %291, %cst_154 {dimension_numbers = #tpu.dot_dimension_numbers<[1], [0], [0], [1], [0, 0, 1, 1], [], []>} : vector<8x32xf32>, vector<32x64xf32>, vector<8x64xf32> -> vector<8x64xf32>
    %c1_155 = arith.constant 1 : index
    %c0_156 = arith.constant 0 : index
    %c0_157 = arith.constant 0 : index
    %293 = vector.load %arg9[%c1_155, %c0_156, %c0_157] : memref<2x1x64xf32, #tpu.memory_space<vmem>>, vector<1x1x64xf32>
    %294 = vector.shape_cast %293 : vector<1x1x64xf32> to vector<1x64xf32>
    %295 = vector.broadcast %294 : vector<1x64xf32> to vector<8x64xf32>
    %296 = arith.addf %292, %295 : vector<8x64xf32>
    %cst_158 = arith.constant 0.000000e+00 : f32
    %297 = vector.broadcast %cst_158 : f32 to vector<8x64xf32>
    %298 = arith.maximumf %296, %297 : vector<8x64xf32>
    %c0_i32_159 = arith.constant 0 : i32
    %299 = vector.broadcast %c0_i32_159 : i32 to vector<8x1xi32>
    %300 = arith.cmpi eq, %0, %299 : vector<8x1xi32>
    %c1_i32_160 = arith.constant 1 : i32
    %301 = tpu.dynamic_rotate %298 by %c1_i32_160 dim 0 : vector<8x64xf32>, i32 -> vector<8x64xf32>
    %cst_161 = arith.constant 0.000000e+00 : f32
    %302 = vector.shape_cast %300 : vector<8x1xi1> to vector<8x1xi1>
    %303 = vector.broadcast %302 : vector<8x1xi1> to vector<8x64xi1>
    %304 = vector.broadcast %cst_161 : f32 to vector<8x64xf32>
    %305 = arith.select %303, %304, %301 : vector<8x64xi1>, vector<8x64xf32>
    %c7_i32_162 = arith.constant 7 : i32
    %306 = vector.broadcast %c7_i32_162 : i32 to vector<8x1xi32>
    %307 = arith.cmpi eq, %0, %306 : vector<8x1xi32>
    %c7_i32_163 = arith.constant 7 : i32
    %308 = tpu.dynamic_rotate %298 by %c7_i32_163 dim 0 : vector<8x64xf32>, i32 -> vector<8x64xf32>
    %cst_164 = arith.constant 0.000000e+00 : f32
    %309 = vector.shape_cast %307 : vector<8x1xi1> to vector<8x1xi1>
    %310 = vector.broadcast %309 : vector<8x1xi1> to vector<8x64xi1>
    %311 = vector.broadcast %cst_164 : f32 to vector<8x64xf32>
    %312 = arith.select %310, %311, %308 : vector<8x64xi1>, vector<8x64xf32>
    %c1_165 = arith.constant 1 : index
    %c0_166 = arith.constant 0 : index
    %c0_167 = arith.constant 0 : index
    %313 = vector.load %arg10[%c1_165, %c0_166, %c0_167] : memref<2x3x64xf32, #tpu.memory_space<vmem>>, vector<1x3x64xf32>
    %314 = vector.shape_cast %313 : vector<1x3x64xf32> to vector<3x64xf32>
    %315 = vector.extract_strided_slice %314 {offsets = [0, 0], sizes = [1, 64], strides = [1, 1]} : vector<3x64xf32> to vector<1x64xf32>
    %316 = vector.broadcast %315 : vector<1x64xf32> to vector<8x64xf32>
    %317 = arith.mulf %305, %316 : vector<8x64xf32>
    %318 = vector.extract_strided_slice %314 {offsets = [1, 0], sizes = [1, 64], strides = [1, 1]} : vector<3x64xf32> to vector<1x64xf32>
    %319 = vector.broadcast %318 : vector<1x64xf32> to vector<8x64xf32>
    %320 = arith.mulf %298, %319 : vector<8x64xf32>
    %321 = arith.addf %317, %320 : vector<8x64xf32>
    %322 = vector.extract_strided_slice %314 {offsets = [2, 0], sizes = [1, 64], strides = [1, 1]} : vector<3x64xf32> to vector<1x64xf32>
    %323 = vector.broadcast %322 : vector<1x64xf32> to vector<8x64xf32>
    %324 = arith.mulf %312, %323 : vector<8x64xf32>
    %325 = arith.addf %321, %324 : vector<8x64xf32>
    %c1_168 = arith.constant 1 : index
    %c0_169 = arith.constant 0 : index
    %c0_170 = arith.constant 0 : index
    %326 = vector.load %arg11[%c1_168, %c0_169, %c0_170] : memref<2x1x64xf32, #tpu.memory_space<vmem>>, vector<1x1x64xf32>
    %327 = vector.shape_cast %326 : vector<1x1x64xf32> to vector<1x64xf32>
    %328 = vector.broadcast %327 : vector<1x64xf32> to vector<8x64xf32>
    %329 = arith.addf %325, %328 : vector<8x64xf32>
    %cst_171 = arith.constant 0.000000e+00 : f32
    %330 = vector.broadcast %cst_171 : f32 to vector<8x64xf32>
    %331 = arith.maximumf %329, %330 : vector<8x64xf32>
    %c1_172 = arith.constant 1 : index
    %c0_173 = arith.constant 0 : index
    %c0_174 = arith.constant 0 : index
    %332 = vector.load %arg12[%c1_172, %c0_173, %c0_174] : memref<2x64x32xf32, #tpu.memory_space<vmem>>, vector<1x64x32xf32>
    %333 = vector.shape_cast %332 : vector<1x64x32xf32> to vector<64x32xf32>
    %cst_175 = arith.constant dense<0.000000e+00> : vector<8x32xf32>
    %334 = tpu.matmul %331, %333, %cst_175 {dimension_numbers = #tpu.dot_dimension_numbers<[1], [0], [0], [1], [0, 0, 1, 1], [], []>} : vector<8x64xf32>, vector<64x32xf32>, vector<8x32xf32> -> vector<8x32xf32>
    %c1_176 = arith.constant 1 : index
    %c0_177 = arith.constant 0 : index
    %c0_178 = arith.constant 0 : index
    %335 = vector.load %arg13[%c1_176, %c0_177, %c0_178] : memref<2x1x32xf32, #tpu.memory_space<vmem>>, vector<1x1x32xf32>
    %336 = vector.shape_cast %335 : vector<1x1x32xf32> to vector<1x32xf32>
    %337 = vector.broadcast %336 : vector<1x32xf32> to vector<8x32xf32>
    %338 = arith.addf %334, %337 : vector<8x32xf32>
    %339 = arith.addf %289, %338 : vector<8x32xf32>
    %340 = arith.addf %75, %339 : vector<8x32xf32>
    %341 = vector.extract_strided_slice %4 {offsets = [0, 64], sizes = [8, 32], strides = [1, 1]} : vector<8x96xf32> to vector<8x32xf32>
    %c2_179 = arith.constant 2 : index
    %c0_180 = arith.constant 0 : index
    %c0_181 = arith.constant 0 : index
    %342 = vector.load %arg6[%c2_179, %c0_180, %c0_181] : memref<3x96x64xf32, #tpu.memory_space<vmem>>, vector<1x96x64xf32>
    %343 = vector.shape_cast %342 : vector<1x96x64xf32> to vector<96x64xf32>
    %c2_182 = arith.constant 2 : index
    %c0_183 = arith.constant 0 : index
    %c0_184 = arith.constant 0 : index
    %344 = vector.load %arg7[%c2_182, %c0_183, %c0_184] : memref<3x1x64xf32, #tpu.memory_space<vmem>>, vector<1x1x64xf32>
    %345 = vector.shape_cast %344 : vector<1x1x64xf32> to vector<1x64xf32>
    %c0_i32_185 = arith.constant 0 : i32
    %346 = vector.broadcast %c0_i32_185 : i32 to vector<8x1xi32>
    %347 = arith.cmpi eq, %0, %346 : vector<8x1xi32>
    %c1_i32_186 = arith.constant 1 : i32
    %348 = tpu.dynamic_rotate %340 by %c1_i32_186 dim 0 : vector<8x32xf32>, i32 -> vector<8x32xf32>
    %cst_187 = arith.constant 0.000000e+00 : f32
    %349 = vector.shape_cast %347 : vector<8x1xi1> to vector<8x1xi1>
    %350 = vector.broadcast %349 : vector<8x1xi1> to vector<8x32xi1>
    %351 = vector.broadcast %cst_187 : f32 to vector<8x32xf32>
    %352 = arith.select %350, %351, %348 : vector<8x32xi1>, vector<8x32xf32>
    %c7_i32_188 = arith.constant 7 : i32
    %353 = vector.broadcast %c7_i32_188 : i32 to vector<8x1xi32>
    %354 = arith.cmpi eq, %0, %353 : vector<8x1xi32>
    %c7_i32_189 = arith.constant 7 : i32
    %355 = tpu.dynamic_rotate %340 by %c7_i32_189 dim 0 : vector<8x32xf32>, i32 -> vector<8x32xf32>
    %cst_190 = arith.constant 0.000000e+00 : f32
    %356 = vector.shape_cast %354 : vector<8x1xi1> to vector<8x1xi1>
    %357 = vector.broadcast %356 : vector<8x1xi1> to vector<8x32xi1>
    %358 = vector.broadcast %cst_190 : f32 to vector<8x32xf32>
    %359 = arith.select %357, %358, %355 : vector<8x32xi1>, vector<8x32xf32>
    %360 = tpu.concatenate %352, %340, %359 in 1 : vector<8x32xf32>, vector<8x32xf32>, vector<8x32xf32> -> vector<8x96xf32>
    %cst_191 = arith.constant dense<0.000000e+00> : vector<8x64xf32>
    %361 = tpu.matmul %360, %343, %cst_191 {dimension_numbers = #tpu.dot_dimension_numbers<[1], [0], [0], [1], [0, 0, 1, 1], [], []>} : vector<8x96xf32>, vector<96x64xf32>, vector<8x64xf32> -> vector<8x64xf32>
    %362 = vector.broadcast %345 : vector<1x64xf32> to vector<8x64xf32>
    %363 = arith.addf %361, %362 : vector<8x64xf32>
    %364 = vector.extract_strided_slice %363 {offsets = [0, 0], sizes = [8, 32], strides = [1, 1]} : vector<8x64xf32> to vector<8x32xf32>
    %365 = vector.extract_strided_slice %363 {offsets = [0, 32], sizes = [8, 32], strides = [1, 1]} : vector<8x64xf32> to vector<8x32xf32>
    %cst_192 = arith.constant 5.000000e-01 : f32
    %366 = vector.broadcast %cst_192 : f32 to vector<8x32xf32>
    %367 = arith.mulf %366, %365 : vector<8x32xf32>
    %368 = math.exp %367 : vector<8x32xf32>
    %369 = arith.mulf %341, %368 : vector<8x32xf32>
    %370 = arith.addf %364, %369 : vector<8x32xf32>
    %371 = tpu.concatenate %204, %198, %199, %288, %282, %283, %370, %364, %365, %174 in 1 : vector<8x32xf32>, vector<8x32xf32>, vector<8x32xf32>, vector<8x32xf32>, vector<8x32xf32>, vector<8x32xf32>, vector<8x32xf32>, vector<8x32xf32>, vector<8x32xf32>, vector<8x32xf32> -> vector<8x320xf32>
    %c0_193 = arith.constant 0 : index
    %c0_194 = arith.constant 0 : index
    %c0_195 = arith.constant 0 : index
    %372 = vector.load %arg15[%c0_193, %c0_194, %c0_195] : memref<1x8x320xf32, #tpu.memory_space<vmem>>, vector<1x8x320xf32>
    %373 = vector.shape_cast %372 : vector<1x8x320xf32> to vector<8x320xf32>
    %374 = vector.shape_cast %371 : vector<8x320xf32> to vector<1x8x320xf32>
    tpu.vector_store %arg15[%c0_193, %c0_194, %c0_195], %374 {strides = array<i32>} : memref<1x8x320xf32, #tpu.memory_space<vmem>>, vector<1x8x320xf32>,
    return
  }
  func.func @transform_0(%arg0: i32) -> (i32, i32, i32) {
    %c0_i32 = arith.constant 0 : i32
    %c0_i32_0 = arith.constant 0 : i32
    %c0_i32_1 = arith.constant 0 : i32
    return %arg0, %c0_i32, %c0_i32_0 : i32, i32, i32
  }
  func.func @transform_1(%arg0: i32) -> (i32, i32, i32) {
    %c0_i32 = arith.constant 0 : i32
    %c0_i32_0 = arith.constant 0 : i32
    %c0_i32_1 = arith.constant 0 : i32
    return %arg0, %c0_i32, %c0_i32_0 : i32, i32, i32
  }
  func.func @transform_2(%arg0: i32) -> (i32, i32, i32) {
    %c0_i32 = arith.constant 0 : i32
    %c0_i32_0 = arith.constant 0 : i32
    %c0_i32_1 = arith.constant 0 : i32
    %c0_i32_2 = arith.constant 0 : i32
    return %c0_i32, %c0_i32_0, %c0_i32_1 : i32, i32, i32
  }
  func.func @transform_3(%arg0: i32) -> (i32, i32, i32) {
    %c0_i32 = arith.constant 0 : i32
    %c0_i32_0 = arith.constant 0 : i32
    %c0_i32_1 = arith.constant 0 : i32
    %c0_i32_2 = arith.constant 0 : i32
    return %c0_i32, %c0_i32_0, %c0_i32_1 : i32, i32, i32
  }
  func.func @transform_4(%arg0: i32) -> (i32, i32) {
    %c0_i32 = arith.constant 0 : i32
    %c0_i32_0 = arith.constant 0 : i32
    %c0_i32_1 = arith.constant 0 : i32
    return %c0_i32, %c0_i32_0 : i32, i32
  }
  func.func @transform_5(%arg0: i32) -> (i32, i32, i32) {
    %c0_i32 = arith.constant 0 : i32
    %c0_i32_0 = arith.constant 0 : i32
    %c0_i32_1 = arith.constant 0 : i32
    %c0_i32_2 = arith.constant 0 : i32
    return %c0_i32, %c0_i32_0, %c0_i32_1 : i32, i32, i32
  }
  func.func @transform_6(%arg0: i32) -> (i32, i32, i32) {
    %c0_i32 = arith.constant 0 : i32
    %c0_i32_0 = arith.constant 0 : i32
    %c0_i32_1 = arith.constant 0 : i32
    %c0_i32_2 = arith.constant 0 : i32
    return %c0_i32, %c0_i32_0, %c0_i32_1 : i32, i32, i32
  }
  func.func @transform_7(%arg0: i32) -> (i32, i32, i32) {
    %c0_i32 = arith.constant 0 : i32
    %c0_i32_0 = arith.constant 0 : i32
    %c0_i32_1 = arith.constant 0 : i32
    %c0_i32_2 = arith.constant 0 : i32
    return %c0_i32, %c0_i32_0, %c0_i32_1 : i32, i32, i32
  }
  func.func @transform_8(%arg0: i32) -> (i32, i32, i32) {
    %c0_i32 = arith.constant 0 : i32
    %c0_i32_0 = arith.constant 0 : i32
    %c0_i32_1 = arith.constant 0 : i32
    %c0_i32_2 = arith.constant 0 : i32
    return %c0_i32, %c0_i32_0, %c0_i32_1 : i32, i32, i32
  }
  func.func @transform_9(%arg0: i32) -> (i32, i32, i32) {
    %c0_i32 = arith.constant 0 : i32
    %c0_i32_0 = arith.constant 0 : i32
    %c0_i32_1 = arith.constant 0 : i32
    %c0_i32_2 = arith.constant 0 : i32
    return %c0_i32, %c0_i32_0, %c0_i32_1 : i32, i32, i32
  }
  func.func @transform_10(%arg0: i32) -> (i32, i32, i32) {
    %c0_i32 = arith.constant 0 : i32
    %c0_i32_0 = arith.constant 0 : i32
    %c0_i32_1 = arith.constant 0 : i32
    %c0_i32_2 = arith.constant 0 : i32
    return %c0_i32, %c0_i32_0, %c0_i32_1 : i32, i32, i32
  }
  func.func @transform_11(%arg0: i32) -> (i32, i32, i32) {
    %c0_i32 = arith.constant 0 : i32
    %c0_i32_0 = arith.constant 0 : i32
    %c0_i32_1 = arith.constant 0 : i32
    %c0_i32_2 = arith.constant 0 : i32
    return %c0_i32, %c0_i32_0, %c0_i32_1 : i32, i32, i32
  }
  func.func @transform_12(%arg0: i32) -> (i32, i32, i32) {
    %c0_i32 = arith.constant 0 : i32
    %c0_i32_0 = arith.constant 0 : i32
    %c0_i32_1 = arith.constant 0 : i32
    %c0_i32_2 = arith.constant 0 : i32
    return %c0_i32, %c0_i32_0, %c0_i32_1 : i32, i32, i32
  }
  func.func @transform_13(%arg0: i32) -> (i32, i32) {
    %c0_i32 = arith.constant 0 : i32
    %c0_i32_0 = arith.constant 0 : i32
    %c0_i32_1 = arith.constant 0 : i32
    return %c0_i32, %c0_i32_0 : i32, i32
  }
  func.func @transform_14(%arg0: i32) -> (i32, i32, i32) {
    %c0_i32 = arith.constant 0 : i32
    %c0_i32_0 = arith.constant 0 : i32
    %c0_i32_1 = arith.constant 0 : i32
    return %arg0, %c0_i32, %c0_i32_0 : i32, i32, i32
  }
}

</mosaic_0001>

<bundles_post_ra>
// kernel: segment_hierarchy_encoder.1
= control target key start
LH: loop header
LB: loop body
LE: loop exit
PB: predicated region body
PF: predicated region fallthrough
CT: control target
= control target key end

     0   :  { %s3111_s29 = smov 0   ;;  %s3922_s0 = inlined_call_operand.vmem [shape: f32[2,8,32], index: 0, kind: input, shape index: {}]   ;;  %s3923_s1 = inlined_call_operand.vmem [shape: f32[2,8,96], index: 1, kind: input, shape index: {}]   ;;  %s3924_s2 = inlined_call_operand.vmem [shape: f32[7,96,32], index: 2, kind: input, shape index: {}]   ;;  %s3925_s3 = inlined_call_operand.vmem [shape: f32[7,1,32], index: 3, kind: input, shape index: {}]   ;;  %s3926_s4 = inlined_call_operand.vmem [shape: f32[1,32], index: 4, kind: input, shape index: {}]   ;;  %s3927_s5 = inlined_call_operand.vmem [shape: f32[3,96,64], index: 5, kind: input, shape index: {}]   ;;  %s3928_s6 = inlined_call_operand.vmem [shape: f32[3,1,64], index: 6, kind: input, shape index: {}]   ;;  %s3929_s7 = inlined_call_operand.vmem [shape: f32[2,32,64], index: 7, kind: input, shape index: {}]   ;;  %s3930_s8 = inlined_call_operand.vmem [shape: f32[2,1,64], index: 8, kind: input, shape index: {}]   ;;  %s3931_s9 = inlined_call_operand.vmem [shape: f32[2,3,64], index: 9, kind: input, shape index: {}]   ;;  %s3932_s10 = inlined_call_operand.vmem [shape: f32[2,1,64], index: 10, kind: input, shape index: {}]   ;;  %s3933_s11 = inlined_call_operand.vmem [shape: f32[2,64,32], index: 11, kind: input, shape index: {}]   ;;  %s3934_s12 = inlined_call_operand.vmem [shape: f32[2,1,32], index: 12, kind: input, shape index: {}]   ;;  %s3935_s13 = inlined_call_operand.vmem [shape: f32[1,32], index: 13, kind: input, shape index: {}]   ;;  %s3936_s14 = inlined_call_operand.vmem [shape: f32[2,8,320], index: 14, kind: output, shape index: {}]  }
   0x1 LB: > { %s2135_s30 = sadd.s32 4294967295, %s3028_s29   ;;  %p2139_p0 = scmp.ge.s32.totalorder %s3028_s29, 1  ;;  %s3028_s29 = sphi %s3111_s29, %s24_s29  }
   0x2   : > { %p420_p1 = scmp.lt.s32.totalorder %s3028_s29, 3 }
   0x4   : > { %p421_p2 = pnand %p2139_p0, %p420_p1 }
   0x5   : > { %p469_p3 = scmp.lt.s32.totalorder (!%p421_p2), %s2135_s30, 1  ;;  %v482_v0 = vlaneseq (!%p421_p2)  ;;  %v486_v1 = vld [vmem:[%s3924_s2] sm:$0xff] (!%p421_p2)  ;;  %v487_v2 = vld [vmem:[%s3924_s2 + $0x8] sm:$0xff] (!%p421_p2)  ;;  %v488_v3 = vld [vmem:[%s3924_s2 + $0x10] sm:$0xff] (!%p421_p2)  ;;  %v3030_v4 = vmov (!%p421_p2), 0.0|0.0   ;;  %vm3031_vm0 = vmmov (!%p421_p2), 0  }
   0x6   : > { %424 = sbr.rel (%p421_p2) target bundleno = 4899 (0x1323), region = 76  ;;  %2785 = vmatprep.subr.bf16.mxu0 (!%p421_p2), %v3030_v4  ;;  %v2786_v5 = vpack.c.bf16 (!%p421_p2), %v487_v2, %v486_v1  ;;  %v489_v6 = vld [vmem:[%s3924_s2 + $0x18] sm:$0xff] (!%p421_p2)  ;;  %2803 = vmatprep.subr.bf16.mxu1 (!%p421_p2), %v3030_v4  ;;  %v490_v9 = vld [vmem:[%s3924_s2 + $0x20] sm:$0xff] (!%p421_p2)  ;;  %v491_v10 = vld [vmem:[%s3924_s2 + $0x28] sm:$0xff] (!%p421_p2)  ;;  %v3032_v11 = vmov (!%p421_p2), 0.0   ;;  %s3033_s17 = smov (!%p421_p2), 32  }
   0x7   : > { %v3135_v7 = vshrl.u32 (!%p421_p2), %v482_v0, 7  ;;  %v2789_v8 = vpack.c.bf16 (!%p421_p2), %v489_v6, %v488_v3  ;;  %2479 = vmatprep.mubr.msk.f32.mxu0 (!%p421_p2), %vm3031_vm0, %v3032_v11  ;;  %2506 = vmatprep.mubr.msk.f32.mxu1 (!%p421_p2), %vm3031_vm0, %v3032_v11  ;;  %v2792_v14 = vpack.c.bf16 (!%p421_p2), %v491_v10, %v490_v9  ;;  %v492_v15 = vld [vmem:[%s3924_s2 + $0x30] sm:$0xff] (!%p421_p2)  ;;  %v493_v16 = vld [vmem:[%s3924_s2 + $0x38] sm:$0xff] (!%p421_p2)  ;;  %s3034_s22 = smov (!%p421_p2), 64   ;;  %v494_v19 = vld [vmem:[%s3924_s2 + $0x40] sm:$0xff] (!%p421_p2)  ;;  %vm517_vm3 = vcmask (!%p421_p2), 261120  }
   0x8   : > { %2787 = vmatpush3.bf16.msra.mxu0 (!%p421_p2), %v2786_v5  ;;  %v2795_v18 = vpack.c.bf16 (!%p421_p2), %v493_v16, %v492_v15  ;;  %v495_v20 = vld [vmem:[%s3924_s2 + $0x48] sm:$0xff] (!%p421_p2)  ;;  %v496_v22 = vld [vmem:[%s3924_s2 + $0x50] sm:$0xff] (!%p421_p2)  ;;  %v497_v23 = vld [vmem:[%s3924_s2 + $0x58] sm:$0xff] (!%p421_p2)  ;;  %vm519_vm4 = vcmask (!%p421_p2), 523264   ;;  %vm527_vm5 = vcmask (!%p421_p2), 785408   ;;  %s3035_s28 = smov (!%p421_p2), 96  }
   0x9   : > { %2788 = vmatprep.subr.bf16.mxu0 (!%p421_p2), %v3030_v4  ;;  %vm504_vm1 = vcmp.eq.s32.totalorder (!%p421_p2), %v3135_v7, 7  ;;  %v2798_v21 = vpack.c.bf16 (!%p421_p2), %v495_v20, %v494_v19  ;;  %v2801_v24 = vpack.c.bf16 (!%p421_p2), %v497_v23, %v496_v22  ;;  %vm499_vm2 = vcmp.eq.s32.totalorder (!%p421_p2), %v3135_v7, 0  ;;  %v2145_v31 = vld [vmem:[%s3924_s2 + $0x60] sm:$0xff] (!%p421_p2)  ;;  %v2146_v32 = vld [vmem:[%s3924_s2 + $0x68] sm:$0xff] (!%p421_p2)  ;;  %v2147_v33 = vld [vmem:[%s3924_s2 + $0x70] sm:$0xff] (!%p421_p2) }
   0xa   : > { %v2804_v34 = vpack.c.bf16 (!%p421_p2), %v2146_v32, %v2145_v31  ;;  %v2148_v35 = vld [vmem:[%s3924_s2 + $0x78] sm:$0xff] (!%p421_p2)  ;;  %v2149_v37 = vld [vmem:[%s3924_s2 + $0x80] sm:$0xff] (!%p421_p2)  ;;  %v2150_v38 = vld [vmem:[%s3924_s2 + $0x88] sm:$0xff] (!%p421_p2) }
   0xb   : > { %v2807_v36 = vpack.c.bf16 (!%p421_p2), %v2148_v35, %v2147_v33  ;;  %v2810_v39 = vpack.c.bf16 (!%p421_p2), %v2150_v38, %v2149_v37  ;;  %v2151_v40 = vld [vmem:[%s3924_s2 + $0x90] sm:$0xff] (!%p421_p2)  ;;  %v2152_v41 = vld [vmem:[%s3924_s2 + $0x98] sm:$0xff] (!%p421_p2)  ;;  %v2153_v43 = vld [vmem:[%s3924_s2 + $0xa0] sm:$0xff] (!%p421_p2) }
   0xc   : > { %2790 = vmatpush3.bf16.msra.mxu0 (!%p421_p2), %v2789_v8  ;;  %2805 = vmatpush3.bf16.msra.mxu1 (!%p421_p2), %v2804_v34  ;;  %v2813_v42 = vpack.c.bf16 (!%p421_p2), %v2152_v41, %v2151_v40  ;;  %v2154_v44 = vld [vmem:[%s3924_s2 + $0xa8] sm:$0xff] (!%p421_p2)  ;;  %v2155_v46 = vld [vmem:[%s3924_s2 + $0xb0] sm:$0xff] (!%p421_p2)  ;;  %v2156_v47 = vld [vmem:[%s3924_s2 + $0xb8] sm:$0xff] (!%p421_p2) }
   0xd   : > { %s3938_s30 = smov (!%p469_p3, %s2135_s30), 1  ;;  %2791 = vmatprep.subr.bf16.mxu0 %v3030_v4  ;;  %2806 = vmatprep.subr.bf16.mxu1 %v3030_v4  ;;  %v2816_v45 = vpack.c.bf16 %v2154_v44, %v2153_v43  ;;  %v2819_v48 = vpack.c.bf16 %v2156_v47, %v2155_v46  ;;  %v2143_v49 = vld [vmem:[%s3925_s3] ss:$0 sm:$0xff]  ;;  %v2161_v62 = vld [vmem:[%s3924_s2 + $0xc8] sm:$0xff]  ;;  %v2162_v63 = vld [vmem:[%s3924_s2 + $0xd0] sm:$0xff] }
   0xe   : > { %s2140_s23 = sshll.u32 %s3938_s30, 3  ;;  %v2160_v61 = vld [vmem:[%s3924_s2 + $0xc0] sm:$0xff]  ;;  %v2163_v1 = vld [vmem:[%s3924_s2 + $0xd8] sm:$0xff]  ;;  %v2165_v5 = vld [vmem:[%s3924_s2 + $0xe8] sm:$0xff]  ;;  %s3001_s19 = smul.u32 24, %s3938_s30 }
   0xf   : > { %s472_s16 = scalar_lea.vmem %s3922_s0, %s2140_s23  ;;  %v2822_v0 = vpack.c.bf16 %v2161_v62, %v2160_v61  ;;  %v2825_v2 = vpack.c.bf16 %v2163_v1, %v2162_v63  ;;  %v2164_v3 = vld [vmem:[%s3924_s2 + $0xe0] sm:$0xff]  ;;  %v2166_v8 = vld [vmem:[%s3924_s2 + $0xf0] sm:$0xff]  ;;  %v2167_v9 = vld [vmem:[%s3924_s2 + $0xf8] sm:$0xff]  ;;  %s476_s18 = scalar_lea.vmem %s3923_s1, %s2140_s23 }
  0x10   : > { %v484_v12 = vld [vmem:[%s472_s16] sm:$0xff]  ;;  %2793 = vmatpush3.bf16.msra.mxu0 %v2792_v14  ;;  %2808 = vmatpush3.bf16.msra.mxu1 %v2807_v36  ;;  %v2828_v6 = vpack.c.bf16 %v2165_v5, %v2164_v3  ;;  %v2831_v10 = vpack.c.bf16 %v2167_v9, %v2166_v8  ;;  %v2170_v15 = vld [vmem:[%s3924_s2 + $0x110] sm:$0xff]  ;;  %v2171_v16 = vld [vmem:[%s3924_s2 + $0x118] sm:$0xff]  ;;  %s481_s21 = scalar_lea.vmem %s3936_s14, %s3001_s19 }
  0x11   : > { %510 = vrot.lane.b32.xlu0 %v484_v12, %s3033_s17  ;;  %v505_v13 = vrot.slane %v484_v12, 1  ;;  %2794 = vmatprep.subr.bf16.mxu0 %v3030_v4  ;;  %v500_v25 = vrot.slane %v484_v12, 7  ;;  %v2168_v12 = vld [vmem:[%s3924_s2 + $0x100] sm:$0xff]  ;;  %v2176_v32 = vld [vmem:[%s3924_s2 + $0x128] sm:$0xff]  ;;  %v2177_v33 = vld [vmem:[%s3924_s2 + $0x130] sm:$0xff] }
  0x12   : > { %2809 = vmatprep.subr.bf16.mxu1 %v3030_v4  ;;  %v2175_v31 = vld [vmem:[%s3924_s2 + $0x120] sm:$0xff]  ;;  %v2178_v35 = vld [vmem:[%s3924_s2 + $0x138] sm:$0xff]  ;;  %v2180_v38 = vld [vmem:[%s3924_s2 + $0x148] sm:$0xff] }
  0x13   : > { %v508_v17 = vsel %vm504_vm1, 0.0, %v505_v13  ;;  %v503_v27 = vsel %vm499_vm2, 0.0, %v500_v25  ;;  %v2169_v13 = vld [vmem:[%s3924_s2 + $0x108] sm:$0xff]  ;;  %v2840_v34 = vpack.c.bf16 %v2176_v32, %v2175_v31  ;;  %v2843_v36 = vpack.c.bf16 %v2178_v35, %v2177_v33  ;;  %v2179_v37 = vld [vmem:[%s3924_s2 + $0x140] sm:$0xff]  ;;  %v2181_v40 = vld [vmem:[%s3924_s2 + $0x150] sm:$0xff] }
  0x14   : > { %2796 = vmatpush3.bf16.msra.mxu0 %v2795_v18  ;;  %2811 = vmatpush3.bf16.msra.mxu1 %v2810_v39  ;;  %v2834_v14 = vpack.c.bf16 %v2169_v13, %v2168_v12  ;;  %v2158_v18 = vld [vmem:[%s3925_s3 + $0x1] ss:$0 sm:$0xff]  ;;  %v2846_v39 = vpack.c.bf16 %v2180_v38, %v2179_v37  ;;  %v2182_v41 = vld [vmem:[%s3924_s2 + $0x158] sm:$0xff]  ;;  %v2184_v44 = vld [vmem:[%s3924_s2 + $0x168] sm:$0xff] }
  0x15   : > { %514 = vrot.lane.b32.xlu0 %v508_v17, %s3034_s22  ;;  %2797 = vmatprep.subr.bf16.mxu0 %v3030_v4  ;;  %v2837_v17 = vpack.c.bf16 %v2171_v16, %v2170_v15  ;;  %v2183_v43 = vld [vmem:[%s3924_s2 + $0x160] sm:$0xff]  ;;  %v2185_v46 = vld [vmem:[%s3924_s2 + $0x170] sm:$0xff]  ;;  %v2186_v47 = vld [vmem:[%s3924_s2 + $0x178] sm:$0xff] }
  0x16   : > { %2812 = vmatprep.subr.bf16.mxu1 %v3030_v4  ;;  %v2190_v62 = vld [vmem:[%s3924_s2 + $0x180] sm:$0xff]  ;;  %v2191_v63 = vld [vmem:[%s3924_s2 + $0x188] sm:$0xff]  ;;  %v2196_v9 = vld [vmem:[%s3924_s2 + $0x1b0] sm:$0xff] }
  0x17   : > { %v2858_v1 = vpack.c.bf16 %v2191_v63, %v2190_v62  ;;  %v2194_v5 = vld [vmem:[%s3924_s2 + $0x1a0] sm:$0xff]  ;;  %v2200_v16 = vld [vmem:[%s3924_s2 + $0x1d0] sm:$0xff]  ;;  %v2206_v33 = vld [vmem:[%s3924_s2 + $0x1e8] sm:$0xff] }
  0x18   : > { %2799 = vmatpush3.bf16.msra.mxu0 %v2798_v21  ;;  %2814 = vmatpush3.bf16.msra.mxu1 %v2813_v42  ;;  %v2849_v42 = vpack.c.bf16 %v2182_v41, %v2181_v40  ;;  %v2198_v13 = vld [vmem:[%s3924_s2 + $0x1c0] sm:$0xff]  ;;  %v2211_v41 = vld [vmem:[%s3924_s2 + $0x210] sm:$0xff] }
  0x19   : > { %2800 = vmatprep.subr.bf16.mxu0 %v3030_v4  ;;  %2815 = vmatprep.subr.bf16.mxu1 %v3030_v4  ;;  %v2205_v32 = vld [vmem:[%s3924_s2 + $0x1e0] sm:$0xff] }
  0x1a   : > { %v2876_v35 = vpack.c.bf16 %v2206_v33, %v2205_v32  ;;  %v2209_v38 = vld [vmem:[%s3924_s2 + $0x200] sm:$0xff] }
  0x1c   : > { %2802 = vmatpush3.bf16.msra.mxu0 %v2801_v24  ;;  %2817 = vmatpush3.bf16.msra.mxu1 %v2816_v45  ;;  %v2852_v45 = vpack.c.bf16 %v2184_v44, %v2183_v43  ;;  %v2213_v44 = vld [vmem:[%s3924_s2 + $0x220] sm:$0xff] }
  0x1d   : > { %2821 = vmatprep.subr.bf16.mxu0 %v3030_v4  ;;  %2818 = vmatprep.subr.bf16.mxu1 %v3030_v4 }
  0x20   : > { %2820 = vmatpush3.bf16.msra.mxu1 %v2819_v48  ;;  %v2855_v48 = vpack.c.bf16 %v2186_v47, %v2185_v46  ;;  %v2215_v47 = vld [vmem:[%s3924_s2 + $0x230] sm:$0xff] }
  0x21   : > { %2839 = vmatprep.subr.bf16.mxu1 %v3030_v4 }
  0x83   : > { %v511_v26 = vpop.permute.xlu0 %510 }
  0x84   : > { %v518_v28 = vsel %vm517_vm3, %v503_v27, %v511_v26 }
  0x87   : > { %v515_v29 = vpop.permute.xlu0 %514 }
  0x88   : > { %v520_v30 = vsel %vm519_vm4, %v518_v28, %v515_v29 }
  0x89   : > { %2480 = vmatmul.mubr.msk.f32.vlgmr.msra.gmra.mrb[0].mxu0 %vm527_vm5, %v520_v30 }
  0x8a   : > { %2533 = vmatprep.mubr.msk.f32.mxu0 %vm3031_vm0, %v3032_v11  ;;  %2823 = vmatpush3.bf16.msra.mxu0 %v2822_v0  ;;  %v2192_v0 = vld [vmem:[%s3924_s2 + $0x190] sm:$0xff] }
  0x8b   : > { %2824 = vmatprep.subr.bf16.mxu0 %v3030_v4 }
  0x8e   : > { %2826 = vmatpush3.bf16.msra.mxu0 %v2825_v2  ;;  %v2193_v2 = vld [vmem:[%s3924_s2 + $0x198] sm:$0xff] }
  0x8f   : > { %2827 = vmatprep.subr.bf16.mxu0 %v3030_v4  ;;  %v2861_v3 = vpack.c.bf16 %v2193_v2, %v2192_v0  ;;  %v2220_v0 = vld [vmem:[%s3924_s2 + $0x240] sm:$0xff]  ;;  %v2222_v2 = vld [vmem:[%s3924_s2 + $0x250] sm:$0xff] }
  0x92   : > { %2829 = vmatpush3.bf16.msra.mxu0 %v2828_v6  ;;  %v2195_v6 = vld [vmem:[%s3924_s2 + $0x1a8] sm:$0xff] }
  0x93   : > { %2830 = vmatprep.subr.bf16.mxu0 %v3030_v4  ;;  %v2864_v8 = vpack.c.bf16 %v2195_v6, %v2194_v5  ;;  %v2223_v5 = vld [vmem:[%s3924_s2 + $0x258] sm:$0xff] }
  0x94   : > { %v2897_v6 = vpack.c.bf16 %v2223_v5, %v2222_v2 }
  0x96   : > { %2832 = vmatpush3.bf16.msra.mxu0 %v2831_v10  ;;  %v2197_v10 = vld [vmem:[%s3924_s2 + $0x1b8] sm:$0xff] }
  0x97   : > { %2833 = vmatprep.subr.bf16.mxu0 %v3030_v4  ;;  %v2867_v12 = vpack.c.bf16 %v2197_v10, %v2196_v9  ;;  %v2225_v9 = vld [vmem:[%s3924_s2 + $0x268] sm:$0xff] }
  0x9a   : > { %2835 = vmatpush3.bf16.msra.mxu0 %v2834_v14  ;;  %v2199_v14 = vld [vmem:[%s3924_s2 + $0x1c8] sm:$0xff] }
  0x9b   : > { %2836 = vmatprep.subr.bf16.mxu0 %v3030_v4  ;;  %v2870_v15 = vpack.c.bf16 %v2199_v14, %v2198_v13  ;;  %v2227_v13 = vld [vmem:[%s3924_s2 + $0x278] sm:$0xff] }
  0x9e   : > { %2838 = vmatpush3.bf16.msra.mxu0 %v2837_v17  ;;  %v2201_v17 = vld [vmem:[%s3924_s2 + $0x1d8] sm:$0xff] }
  0x9f   : > { %2857 = vmatprep.subr.bf16.mxu0 %v3030_v4 }
 0x15c   : > { %v597_v50 = vpop.f32.mrb[0].mxu0 }
 0x15d   : > { %v3235_v51 = vadd.f32 %v2143_v49, %v597_v50  ;;  %v2481_v52 = vpop.f32.mrb[1].mxu0  ;;  %v2173_v49 = vld [vmem:[%s3925_s3 + $0x2] ss:$0 sm:$0xff] }
 0x15f   : > { %621 = vrot.lane.b32.xlu1 %v3235_v51, %s3033_s17  ;;  %v618_v53 = vrot.slane %v3235_v51, 1  ;;  %v616_v55 = vrot.slane %v3235_v51, 7 }
 0x161   : > { %v619_v54 = vsel %vm504_vm1, 0.0, %v618_v53  ;;  %v617_v57 = vsel %vm499_vm2, 0.0, %v616_v55 }
 0x163   : > { %625 = vrot.lane.b32.xlu1 %v619_v54, %s3034_s22 }
 0x1d1   : > { %v622_v56 = vpop.permute.xlu1 %621 }
 0x1d2   : > { %v628_v58 = vsel %vm517_vm3, %v617_v57, %v622_v56 }
 0x1d5   : > { %v626_v59 = vpop.permute.xlu1 %625 }
 0x1d6   : > { %v629_v60 = vsel %vm519_vm4, %v628_v58, %v626_v59 }
 0x1d7   : > { %2507 = vmatmul.mubr.msk.f32.vlgmr.msra.gmra.mrb[0].mxu1 %vm527_vm5, %v629_v60 }
 0x1d8   : > { %2560 = vmatprep.mubr.msk.f32.mxu1 %vm3031_vm0, %v3032_v11  ;;  %2841 = vmatpush3.bf16.msra.mxu1 %v2840_v34  ;;  %v2207_v34 = vld [vmem:[%s3924_s2 + $0x1f0] sm:$0xff] }
 0x1d9   : > { %2842 = vmatprep.subr.bf16.mxu1 %v3030_v4 }
 0x1dc   : > { %2844 = vmatpush3.bf16.msra.mxu1 %v2843_v36  ;;  %v2208_v36 = vld [vmem:[%s3924_s2 + $0x1f8] sm:$0xff] }
 0x1dd   : > { %2845 = vmatprep.subr.bf16.mxu1 %v3030_v4  ;;  %v2879_v37 = vpack.c.bf16 %v2208_v36, %v2207_v34  ;;  %v1263_v34 = vld [vmem:[%s3927_s5] sm:$0xff]  ;;  %v1265_v36 = vld [vmem:[%s3927_s5 + $0x10] sm:$0xff] }
 0x1e0   : > { %2847 = vmatpush3.bf16.msra.mxu1 %v2846_v39  ;;  %v2210_v39 = vld [vmem:[%s3924_s2 + $0x208] sm:$0xff] }
 0x1e1   : > { %2848 = vmatprep.subr.bf16.mxu1 %v3030_v4  ;;  %v2882_v40 = vpack.c.bf16 %v2210_v39, %v2209_v38  ;;  %v1266_v38 = vld [vmem:[%s3927_s5 + $0x18] sm:$0xff] }
 0x1e2   : > { %v2915_v39 = vpack.c.bf16 %v1266_v38, %v1265_v36  ;;  %v1508_v36 = vld [vmem:[%s3933_s11 + $0x30] sm:$0xff] }
 0x1e4   : > { %2850 = vmatpush3.bf16.msra.mxu1 %v2849_v42  ;;  %v2212_v42 = vld [vmem:[%s3924_s2 + $0x218] sm:$0xff] }
 0x1e5   : > { %2851 = vmatprep.subr.bf16.mxu1 %v3030_v4  ;;  %v2885_v43 = vpack.c.bf16 %v2212_v42, %v2211_v41  ;;  %v1268_v41 = vld [vmem:[%s3927_s5 + $0x28] sm:$0xff] }
 0x1e8   : > { %2853 = vmatpush3.bf16.msra.mxu1 %v2852_v45  ;;  %v2214_v45 = vld [vmem:[%s3924_s2 + $0x228] sm:$0xff] }
 0x1e9   : > { %2854 = vmatprep.subr.bf16.mxu1 %v3030_v4  ;;  %v2888_v46 = vpack.c.bf16 %v2214_v45, %v2213_v44  ;;  %v1270_v44 = vld [vmem:[%s3927_s5 + $0x38] sm:$0xff] }
 0x1ec   : > { %2856 = vmatpush3.bf16.msra.mxu1 %v2855_v48  ;;  %v2216_v48 = vld [vmem:[%s3924_s2 + $0x238] sm:$0xff] }
 0x1ed   : > { %2875 = vmatprep.subr.bf16.mxu1 %v3030_v4 }
 0x2aa   : > { %v705_v19 = vpop.f32.mrb[0].mxu1 }
 0x2ab   : > { %v706_v20 = vadd.f32 %v2158_v18, %v705_v19  ;;  %v2508_v21 = vpop.f32.mrb[1].mxu1  ;;  %v2873_v18 = vpack.c.bf16 %v2201_v17, %v2200_v16  ;;  %v2188_v19 = vld [vmem:[%s3925_s3 + $0x3] ss:$0 sm:$0xff]  ;;  %v2229_v16 = vld [vmem:[%s3924_s2 + $0x288] sm:$0xff] }
 0x2ad   : > { %v709_v22 = vmax.f32 %v706_v20, 0.0 }
 0x2af   : > { %730 = vrot.lane.b32.xlu0 %v709_v22, %s3033_s17  ;;  %v727_v23 = vrot.slane %v709_v22, 1  ;;  %v725_v25 = vrot.slane %v709_v22, 7 }
 0x2b1   : > { %v728_v24 = vsel %vm504_vm1, 0.0, %v727_v23  ;;  %v726_v27 = vsel %vm499_vm2, 0.0, %v725_v25 }
 0x2b2   : > { %734 = vrot.lane.b32.xlu1 %v728_v24, %s3034_s22 }
 0x321   : > { %v731_v26 = vpop.permute.xlu0 %730 }
 0x322   : > { %v737_v28 = vsel %vm517_vm3, %v726_v27, %v731_v26 }
 0x324   : > { %v735_v29 = vpop.permute.xlu1 %734 }
 0x325   : > { %v738_v30 = vsel %vm519_vm4, %v737_v28, %v735_v29 }
 0x326   : > { %2534 = vmatmul.mubr.msk.f32.vlgmr.msra.gmra.mrb[2].mxu0 %vm527_vm5, %v738_v30 }
 0x327   : > { %2587 = vmatprep.mubr.msk.f32.mxu0 %vm3031_vm0, %v3032_v11  ;;  %2859 = vmatpush3.bf16.msra.mxu0 %v2858_v1  ;;  %v2221_v1 = vld [vmem:[%s3924_s2 + $0x248] sm:$0xff] }
 0x328   : > { %2860 = vmatprep.subr.bf16.mxu0 %v3030_v4 }
 0x32b   : > { %2862 = vmatpush3.bf16.msra.mxu0 %v2861_v3  ;;  %v2894_v3 = vpack.c.bf16 %v2221_v1, %v2220_v0 }
 0x32c   : > { %2863 = vmatprep.subr.bf16.mxu0 %v3030_v4 }
 0x32f   : > { %2865 = vmatpush3.bf16.msra.mxu0 %v2864_v8  ;;  %v2224_v8 = vld [vmem:[%s3924_s2 + $0x260] sm:$0xff] }
 0x330   : > { %2866 = vmatprep.subr.bf16.mxu0 %v3030_v4  ;;  %v2900_v10 = vpack.c.bf16 %v2225_v9, %v2224_v8  ;;  %v1387_v8 = vld [vmem:[%s3929_s7 + $0x8] sm:$0xff] }
 0x333   : > { %2868 = vmatpush3.bf16.msra.mxu0 %v2867_v12  ;;  %v2226_v12 = vld [vmem:[%s3924_s2 + $0x270] sm:$0xff] }
 0x334   : > { %2869 = vmatprep.subr.bf16.mxu0 %v3030_v4  ;;  %v2903_v14 = vpack.c.bf16 %v2227_v13, %v2226_v12 }
 0x337   : > { %2871 = vmatpush3.bf16.msra.mxu0 %v2870_v15  ;;  %v2228_v15 = vld [vmem:[%s3924_s2 + $0x280] sm:$0xff] }
 0x338   : > { %2872 = vmatprep.subr.bf16.mxu0 %v3030_v4  ;;  %v2906_v17 = vpack.c.bf16 %v2229_v16, %v2228_v15 }
 0x33b   : > { %2874 = vmatpush3.bf16.msra.mxu0 %v2873_v18  ;;  %v2230_v18 = vld [vmem:[%s3924_s2 + $0x290] sm:$0xff] }
 0x33c   : > { %2893 = vmatprep.subr.bf16.mxu0 %v3030_v4 }
 0x3f9   : > { %v814_v50 = vpop.f32.mrb[2].mxu0 }
 0x3fa   : > { %v815_v52 = vadd.f32 %v2173_v49, %v814_v50  ;;  %v2535_v53 = vpop.f32.mrb[3].mxu0  ;;  %v2891_v49 = vpack.c.bf16 %v2216_v48, %v2215_v47  ;;  %v2203_v50 = vld [vmem:[%s3925_s3 + $0x4] ss:$0 sm:$0xff]  ;;  %v1272_v47 = vld [vmem:[%s3927_s5 + $0x48] sm:$0xff] }
 0x3fc   : > { %v3353_v54 = vadd.f32 %v815_v52, %v3235_v51 }
 0x3fe   : > { %839 = vrot.lane.b32.xlu0 %v3353_v54, %s3033_s17  ;;  %v836_v55 = vrot.slane %v3353_v54, 1  ;;  %v834_v57 = vrot.slane %v3353_v54, 7 }
 0x400   : > { %v837_v56 = vsel %vm504_vm1, 0.0, %v836_v55  ;;  %v835_v59 = vsel %vm499_vm2, 0.0, %v834_v57 }
 0x401   : > { %843 = vrot.lane.b32.xlu1 %v837_v56, %s3034_s22 }
 0x470   : > { %v840_v58 = vpop.permute.xlu0 %839 }
 0x471   : > { %v846_v60 = vsel %vm517_vm3, %v835_v59, %v840_v58 }
 0x473   : > { %v844_v51 = vpop.permute.xlu1 %843 }
 0x474   : > { %v847_v61 = vsel %vm519_vm4, %v846_v60, %v844_v51 }
 0x475   : > { %2561 = vmatmul.mubr.msk.f32.vlgmr.msra.gmra.mrb[2].mxu1 %vm527_vm5, %v847_v61 }
 0x476   : > { %2614 = vmatprep.mubr.msk.f32.mxu1 %vm3031_vm0, %v3032_v11  ;;  %2877 = vmatpush3.bf16.msra.mxu1 %v2876_v35  ;;  %v1264_v35 = vld [vmem:[%s3927_s5 + $0x8] sm:$0xff] }
 0x477   : > { %2878 = vmatprep.subr.bf16.mxu1 %v3030_v4 }
 0x47a   : > { %2880 = vmatpush3.bf16.msra.mxu1 %v2879_v37  ;;  %v2912_v37 = vpack.c.bf16 %v1264_v35, %v1263_v34  ;;  %v1507_v34 = vld [vmem:[%s3933_s11 + $0x28] sm:$0xff] }
 0x47b   : > { %2881 = vmatprep.subr.bf16.mxu1 %v3030_v4 }
 0x47e   : > { %2883 = vmatpush3.bf16.msra.mxu1 %v2882_v40  ;;  %v1267_v40 = vld [vmem:[%s3927_s5 + $0x20] sm:$0xff] }
 0x47f   : > { %2884 = vmatprep.subr.bf16.mxu1 %v3030_v4  ;;  %v2918_v42 = vpack.c.bf16 %v1268_v41, %v1267_v40  ;;  %v1478_v41 = vsub.s32 0, %v3135_v7 }
 0x482   : > { %2886 = vmatpush3.bf16.msra.mxu1 %v2885_v43  ;;  %v1269_v43 = vld [vmem:[%s3927_s5 + $0x30] sm:$0xff] }
 0x483   : > { %2887 = vmatprep.subr.bf16.mxu1 %v3030_v4  ;;  %v2921_v45 = vpack.c.bf16 %v1270_v44, %v1269_v43  ;;  %v1475_v44 = vld [vmem:[%s3931_s9] sm:$0x7] }
 0x486   : > { %2889 = vmatpush3.bf16.msra.mxu1 %v2888_v46  ;;  %v1271_v46 = vld [vmem:[%s3927_s5 + $0x40] sm:$0xff] }
 0x487   : > { %2890 = vmatprep.subr.bf16.mxu1 %v3030_v4  ;;  %v2924_v48 = vpack.c.bf16 %v1272_v47, %v1271_v46  ;;  %v1489_v46 = vsub.s32 2, %v3135_v7 }
 0x48a   : > { %2892 = vmatpush3.bf16.msra.mxu1 %v2891_v49  ;;  %v1273_v49 = vld [vmem:[%s3927_s5 + $0x50] sm:$0xff] }
 0x48b   : > { %2911 = vmatprep.subr.bf16.mxu1 %v3030_v4 }
 0x548   : > { %v923_v20 = vpop.f32.mrb[2].mxu1 }
 0x549   : > { %v924_v21 = vadd.f32 %v2188_v19, %v923_v20  ;;  %v2562_v22 = vpop.f32.mrb[3].mxu1  ;;  %v2231_v19 = vld [vmem:[%s3924_s2 + $0x298] sm:$0xff] }
 0x54a   : > { %v2909_v20 = vpack.c.bf16 %v2231_v19, %v2230_v18  ;;  %v1389_v18 = vld [vmem:[%s3929_s7 + $0x18] sm:$0xff] }
 0x54b   : > { %v927_v23 = vmax.f32 %v924_v21, 0.0  ;;  %v2218_v21 = vld [vmem:[%s3925_s3 + $0x5] ss:$0 sm:$0xff] }
 0x54d   : > { %948 = vrot.lane.b32.xlu0 %v927_v23, %s3033_s17  ;;  %v945_v24 = vrot.slane %v927_v23, 1  ;;  %v943_v26 = vrot.slane %v927_v23, 7 }
 0x54f   : > { %v946_v25 = vsel %vm504_vm1, 0.0, %v945_v24  ;;  %v944_v28 = vsel %vm499_vm2, 0.0, %v943_v26 }
 0x550   : > { %952 = vrot.lane.b32.xlu1 %v946_v25, %s3034_s22 }
 0x5bf   : > { %v949_v27 = vpop.permute.xlu0 %948 }
 0x5c0   : > { %v955_v29 = vsel %vm517_vm3, %v944_v28, %v949_v27 }
 0x5c2   : > { %v953_v30 = vpop.permute.xlu1 %952 }
 0x5c3   : > { %v956_v31 = vsel %vm519_vm4, %v955_v29, %v953_v30 }
 0x5c4   : > { %2588 = vmatmul.mubr.msk.f32.vlgmr.msra.gmra.mrb[4].mxu0 %vm527_vm5, %v956_v31 }
 0x5c5   : > { %2641 = vmatprep.mubr.msk.f32.mxu0 %vm3031_vm0, %v3032_v11  ;;  %2895 = vmatpush3.bf16.msra.mxu0 %v2894_v3 }
 0x5c6   : > { %2896 = vmatprep.subr.bf16.mxu0 %v3030_v4 }
 0x5c9   : > { %2898 = vmatpush3.bf16.msra.mxu0 %v2897_v6  ;;  %v1386_v6 = vld [vmem:[%s3929_s7] sm:$0xff] }
 0x5ca   : > { %2899 = vmatprep.subr.bf16.mxu0 %v3030_v4  ;;  %v2930_v9 = vpack.c.bf16 %v1387_v8, %v1386_v6  ;;  %v2247_v8 = vld [vmem:[%s3927_s5 + $0x78] sm:$0xff] }
 0x5cd   : > { %2901 = vmatpush3.bf16.msra.mxu0 %v2900_v10  ;;  %v2236_v10 = vld [vmem:[%s3928_s6] ss:$0 sm:$0xff] }
 0x5ce   : > { %2902 = vmatprep.subr.bf16.mxu0 %v3030_v4 }
 0x5d1   : > { %2904 = vmatpush3.bf16.msra.mxu0 %v2903_v14 }
 0x5d2   : > { %2905 = vmatprep.subr.bf16.mxu0 %v3030_v4 }
 0x5d5   : > { %2907 = vmatpush3.bf16.msra.mxu0 %v2906_v17  ;;  %v1388_v17 = vld [vmem:[%s3929_s7 + $0x10] sm:$0xff] }
 0x5d6   : > { %2908 = vmatprep.subr.bf16.mxu0 %v3030_v4  ;;  %v2933_v19 = vpack.c.bf16 %v1389_v18, %v1388_v17  ;;  %v2252_v18 = vld [vmem:[%s3927_s5 + $0xa0] sm:$0xff] }
 0x5d9   : > { %2910 = vmatpush3.bf16.msra.mxu0 %v2909_v20 }
 0x5da   : > { %2947 = vmatprep.subr.bf16.mxu0 %v3030_v4 }
 0x697   : > { %v1032_v52 = vpop.f32.mrb[4].mxu0 }
 0x698   : > { %v1033_v53 = vadd.f32 %v2203_v50, %v1032_v52  ;;  %v2589_v55 = vpop.f32.mrb[5].mxu0  ;;  %v1274_v50 = vld [vmem:[%s3927_s5 + $0x58] sm:$0xff] }
 0x699   : > { %v2927_v52 = vpack.c.bf16 %v1274_v50, %v1273_v49  ;;  %v2235_v55 = vld [vmem:[%s3926_s4] ss:$0 sm:$0xff] }
 0x69a   : > { %v3471_v56 = vadd.f32 %v1033_v53, %v3353_v54  ;;  %v2233_v53 = vld [vmem:[%s3925_s3 + $0x6] ss:$0 sm:$0xff] }
 0x69c   : > { %1058 = vrot.lane.b32.xlu0 %v3471_v56, %s3033_s17  ;;  %v1055_v57 = vrot.slane %v3471_v56, 1  ;;  %v1053_v59 = vrot.slane %v3471_v56, 7 }
 0x69e   : > { %v1056_v58 = vsel %vm504_vm1, 0.0, %v1055_v57  ;;  %v1054_v51 = vsel %vm499_vm2, 0.0, %v1053_v59 }
 0x69f   : > { %1062 = vrot.lane.b32.xlu1 %v1056_v58, %s3034_s22 }
 0x70e   : > { %v1059_v60 = vpop.permute.xlu0 %1058 }
 0x70f   : > { %v1065_v61 = vsel %vm517_vm3, %v1054_v51, %v1059_v60 }
 0x711   : > { %v1063_v62 = vpop.permute.xlu1 %1062 }
 0x712   : > { %v1066_v63 = vsel %vm519_vm4, %v1065_v61, %v1063_v62 }
 0x713   : > { %2615 = vmatmul.mubr.msk.f32.vlgmr.msra.gmra.mrb[4].mxu1 %vm527_vm5, %v1066_v63 }
 0x714   : > { %2668 = vmatprep.mubr.msk.f32.mxu1 %vm3031_vm0, %v3032_v11  ;;  %2913 = vmatpush3.bf16.msra.mxu1 %v2912_v37  ;;  %v1509_v37 = vld [vmem:[%s3933_s11 + $0x38] sm:$0xff] }
 0x715   : > { %2914 = vmatprep.subr.bf16.mxu1 %v3030_v4  ;;  %v2945_v38 = vpack.c.bf16 %v1509_v37, %v1508_v36 }
 0x718   : > { %2916 = vmatpush3.bf16.msra.mxu1 %v2915_v39  ;;  %v2239_v39 = vld [vmem:[%s3930_s8] ss:$0 sm:$0xff] }
 0x719   : > { %2917 = vmatprep.subr.bf16.mxu1 %v3030_v4 }
 0x71c   : > { %2919 = vmatpush3.bf16.msra.mxu1 %v2918_v42  ;;  %v1483_v42 = vsub.s32 1, %v3135_v7 }
 0x71d   : > { %2920 = vmatprep.subr.bf16.mxu1 %v3030_v4 }
 0x71e   : > { %v1484_v49 = vrot.slane %v1475_v44, %v1483_v42 }
 0x720   : > { %2922 = vmatpush3.bf16.msra.mxu1 %v2921_v45 }
 0x721   : > { %2923 = vmatprep.subr.bf16.mxu1 %v3030_v4 }
 0x724   : > { %2925 = vmatpush3.bf16.msra.mxu1 %v2924_v48  ;;  %v1479_v48 = vrot.slane %v1475_v44, %v1478_v41 }
 0x725   : > { %2926 = vmatprep.subr.bf16.mxu1 %v3030_v4 }
 0x728   : > { %2928 = vmatpush3.bf16.msra.mxu1 %v2927_v52 }
 0x729   : > { %2929 = vmatprep.subr.bf16.mxu1 %v3030_v4 }
 0x7e6   : > { %v1142_v22 = vpop.f32.mrb[4].mxu1 }
 0x7e7   : > { %v1143_v23 = vadd.f32 %v2218_v21, %v1142_v22  ;;  %v2616_v24 = vpop.f32.mrb[5].mxu1  ;;  %v3632_v21 = vld [vmem:[%s476_s18] sm:$0xff] }
 0x7e8   : > { %v2238_v24 = vld [vmem:[%s3935_s13] ss:$0 sm:$0xff] }
 0x7e9   : > { %v1146_v25 = vmax.f32 %v1143_v23, 0.0 }
 0x7eb   : > { %1167 = vrot.lane.b32.xlu0 %v1146_v25, %s3033_s17  ;;  %v1164_v26 = vrot.slane %v1146_v25, 1  ;;  %v1162_v28 = vrot.slane %v1146_v25, 7 }
 0x7ed   : > { %v1165_v27 = vsel %vm504_vm1, 0.0, %v1164_v26  ;;  %v1163_v30 = vsel %vm499_vm2, 0.0, %v1162_v28  ;;  %v1503_v28 = vld [vmem:[%s3933_s11 + $0x8] sm:$0xff] }
 0x7ee   : > { %1171 = vrot.lane.b32.xlu1 %v1165_v27, %s3034_s22  ;;  %v1502_v27 = vld [vmem:[%s3933_s11] sm:$0xff] }
 0x85d   : > { %v1168_v29 = vpop.permute.xlu0 %1167 }
 0x85e   : > { %v1174_v31 = vsel %vm517_vm3, %v1163_v30, %v1168_v29  ;;  %v2936_v29 = vpack.c.bf16 %v1503_v28, %v1502_v27  ;;  %v1504_v30 = vld [vmem:[%s3933_s11 + $0x10] sm:$0xff]  ;;  %v2242_v27 = vld [vmem:[%s3934_s12] ss:$0 sm:$0xff] }
 0x860   : > { %v1172_v32 = vpop.permute.xlu1 %1171 }
 0x861   : > { %v1175_v33 = vsel %vm519_vm4, %v1174_v31, %v1172_v32  ;;  %v1505_v31 = vld [vmem:[%s3933_s11 + $0x18] sm:$0xff] }
 0x862   : > { %2642 = vmatmul.mubr.msk.f32.vlgmr.msra.gmra.mrb[6].mxu0 %vm527_vm5, %v1175_v33  ;;  %v2939_v32 = vpack.c.bf16 %v1505_v31, %v1504_v30  ;;  %v1506_v33 = vld [vmem:[%s3933_s11 + $0x20] sm:$0xff] }
 0x863   : > { %2725 = vmatprep.mubr.msk.f32.mxu0 %vm3031_vm0, %v3032_v11  ;;  %v2942_v35 = vpack.c.bf16 %v1507_v34, %v1506_v33 }
 0x935   : > { %v1251_v57 = vpop.f32.mrb[6].mxu0 }
 0x936   : > { %v1252_v58 = vadd.f32 %v2233_v53, %v1251_v57  ;;  %v2643_v59 = vpop.f32.mrb[7].mxu0  ;;  %v1490_v53 = vrot.slane %v1475_v44, %v1489_v46  ;;  %v2257_v44 = vld [vmem:[%s3928_s6 + $0x1] ss:$0 sm:$0xff] }
 0x938   : > { %v1261_v60 = vmul.f32 %v2235_v55, %v1252_v58 }
 0x93a   : > { %v1262_v51 = vadd.f32 %v1261_v60, %v3471_v56 }
 0x93c   : > { %1281 = vrot.lane.b32.xlu0 %v1262_v51, %s3033_s17  ;;  %v1278_v61 = vrot.slane %v1262_v51, 1  ;;  %v1276_v63 = vrot.slane %v1262_v51, 7 }
 0x93e   : > { %v1279_v62 = vsel %vm504_vm1, 0.0, %v1278_v61  ;;  %v1277_v1 = vsel %vm499_vm2, 0.0, %v1276_v63  ;;  %v2241_v61 = vld [vmem:[%s3932_s10] ss:$0 sm:$0xff] }
 0x93f   : > { %1285 = vrot.lane.b32.xlu1 %v1279_v62, %s3034_s22 }
 0x9ae   : > { %v3596_v0 = vpop.permute.xlu0 %1281 }
 0x9af   : > { %v1288_v2 = vsel %vm517_vm3, %v1277_v1, %v3596_v0 }
 0x9b1   : > { %v1286_v3 = vpop.permute.xlu1 %1285 }
 0x9b2   : > { %v1289_v5 = vsel %vm519_vm4, %v1288_v2, %v1286_v3  ;;  %v2244_v2 = vld [vmem:[%s3927_s5 + $0x60] sm:$0xff]  ;;  %v2245_v3 = vld [vmem:[%s3927_s5 + $0x68] sm:$0xff] }
 0x9b3   : > { %2669 = vmatmul.mubr.msk.f32.vlgmr.msra.gmra.mrb[6].mxu1 %vm527_vm5, %v1289_v5  ;;  %v2246_v5 = vld [vmem:[%s3927_s5 + $0x70] sm:$0xff]  ;;  %v2948_v6 = vpack.c.bf16 %v2245_v3, %v2244_v2  ;;  %v2273_v3 = vld [vmem:[%s3933_s11 + $0x60] sm:$0xff] }
 0x9b4   : > { %2679 = vmatprep.mubr.msk.f32.mxu1 %vm3031_vm0, %v3032_v11  ;;  %2931 = vmatpush3.bf16.msra.mxu1 %v2930_v9  ;;  %v2951_v9 = vpack.c.bf16 %v2247_v8, %v2246_v5  ;;  %v2274_v5 = vld [vmem:[%s3933_s11 + $0x68] sm:$0xff]  ;;  %v2275_v8 = vld [vmem:[%s3933_s11 + $0x70] sm:$0xff] }
 0x9b5   : > { %2932 = vmatprep.subr.bf16.mxu1 %v3030_v4  ;;  %2949 = vmatpush3.bf16.msra.mxu0 %v2948_v6  ;;  %v2978_v6 = vpack.c.bf16 %v2274_v5, %v2273_v3 }
 0x9b6   : > { %2950 = vmatprep.subr.bf16.mxu0 %v3030_v4 }
 0x9b8   : > { %2934 = vmatpush3.bf16.msra.mxu1 %v2933_v19  ;;  %v2253_v19 = vld [vmem:[%s3927_s5 + $0xa8] sm:$0xff] }
 0x9b9   : > { %2935 = vmatprep.subr.bf16.mxu1 %v3030_v4  ;;  %2952 = vmatpush3.bf16.msra.mxu0 %v2951_v9  ;;  %v2276_v9 = vld [vmem:[%s3933_s11 + $0x78] sm:$0xff] }
 0x9ba   : > { %2953 = vmatprep.subr.bf16.mxu0 %v3030_v4 }
 0xa86   : > { %v1365_v12 = vpop.f32.mrb[6].mxu1 }
 0xa87   : > { %v3616_v13 = vadd.f32 %v2236_v10, %v1365_v12  ;;  %v2670_v14 = vpop.f32.mrb[7].mxu1  ;;  %v2248_v10 = vld [vmem:[%s3927_s5 + $0x80] sm:$0xff]  ;;  %v2249_v12 = vld [vmem:[%s3927_s5 + $0x88] sm:$0xff] }
 0xa88   : > { %v2954_v14 = vpack.c.bf16 %v2249_v12, %v2248_v10  ;;  %v2981_v10 = vpack.c.bf16 %v2276_v9, %v2275_v8  ;;  %v2264_v12 = vld [vmem:[%s3930_s8 + $0x1] ss:$0 sm:$0xff] }
 0xa89   : > { %v1369_v15 = vmul.f32 0.5, %v3616_v13 }
 0xa8a   : > { %2955 = vmatpush3.bf16.msra.mxu0 %v2954_v14 }
 0xa8b   : > { %v1370_v16 = vmul.f32 1.442695, %v1369_v15  ;;  %v2250_v15 = vld [vmem:[%s3927_s5 + $0x90] sm:$0xff]  ;;  %2956 = vmatprep.subr.bf16.mxu0 %v3030_v4 }
 0xa8d   : > { %3016 = vpow2.f32 %v1370_v16  ;;  %v2251_v16 = vld [vmem:[%s3927_s5 + $0x98] sm:$0xff] }
 0xa8e   : > { %v2957_v17 = vpack.c.bf16 %v2251_v16, %v2250_v15  ;;  %v2266_v16 = vld [vmem:[%s3931_s9 + $0x4] sm:$0x7] }
 0xa90   : > { %2958 = vmatpush3.bf16.msra.mxu0 %v2957_v17 }
 0xa91   : > { %2959 = vmatprep.subr.bf16.mxu0 %v3030_v4 }
 0xa97   : > { %v3017_v20 = vpop.eup %3016 }
 0xa98   : > { %1373 = vrot.lane.b32.xlu0 %v3017_v20, %s3035_s28  ;;  %v2960_v20 = vpack.c.bf16 %v2253_v19, %v2252_v18  ;;  %v1806_v19 = vrot.slane %v2266_v16, %v1478_v41  ;;  %v2268_v41 = vld [vmem:[%s3932_s10 + $0x1] ss:$0 sm:$0xff] }
 0xa9a   : > { %2961 = vmatpush3.bf16.msra.mxu0 %v2960_v20  ;;  %v1811_v20 = vrot.slane %v2266_v16, %v1483_v42 }
 0xa9b   : > { %2962 = vmatprep.subr.bf16.mxu0 %v3030_v4 }
 0xb0a   : > { %v1374_v22 = vpop.permute.xlu0 %1373 }
 0xb0b   : > { %v1376_v23 = vmul.f32 %v1374_v22, %v3632_v21  ;;  %v2254_v22 = vld [vmem:[%s3927_s5 + $0xb0] sm:$0xff] }
 0xb0d   : > { %v3639_v25 = vadd.f32 %v1376_v23, %v3616_v13  ;;  %v2255_v23 = vld [vmem:[%s3927_s5 + $0xb8] sm:$0xff] }
 0xb0f   : > { %v3642_v26 = vadd.f32 %v2238_v24, %v3639_v25  ;;  %v2963_v24 = vpack.c.bf16 %v2255_v23, %v2254_v22 }
 0xb11   : > { %2680 = vmatmul.mubr.msk.f32.vlgmr.msra.gmra.mrb[8].mxu1 %vm517_vm3, %v3642_v26  ;;  %2964 = vmatpush3.bf16.msra.mxu0 %v2963_v24  ;;  %v1817_v24 = vrot.slane %v2266_v16, %v1489_v46  ;;  %v2280_v46 = vld [vmem:[%s3927_s5 + $0xc0] sm:$0xff] }
 0xb12   : > { %2698 = vmatprep.mubr.msk.f32.mxu1 %vm3031_vm0, %v3032_v11  ;;  %2937 = vmatpush3.bf16.msra.mxu1 %v2936_v29 }
 0xb13   : > { %2938 = vmatprep.subr.bf16.mxu1 %v3030_v4  ;;  %2983 = vmatprep.subr.bf16.mxu0 %v3030_v4 }
 0xb16   : > { %2940 = vmatpush3.bf16.msra.mxu1 %v2939_v32 }
 0xb17   : > { %2941 = vmatprep.subr.bf16.mxu1 %v3030_v4 }
 0xb1a   : > { %2943 = vmatpush3.bf16.msra.mxu1 %v2942_v35 }
 0xb1b   : > { %2944 = vmatprep.subr.bf16.mxu1 %v3030_v4 }
 0xb1e   : > { %2946 = vmatpush3.bf16.msra.mxu1 %v2945_v38 }
 0xb1f   : > { %2965 = vmatprep.subr.bf16.mxu1 %v3030_v4 }
 0xbe4   : > { %v1466_v40 = vpop.f32.mrb[8].mxu1 }
 0xbe5   : > { %v1467_v43 = vadd.f32 %v2239_v39, %v1466_v40  ;;  %v2681_v45 = vpop.f32.mrb[9].mxu1  ;;  %v2260_v40 = vld [vmem:[%s3929_s7 + $0x28] sm:$0xff] }
 0xbe7   : > { %v1470_v47 = vmax.f32 %v1467_v43, 0.0 }
 0xbe9   : > { %v1471_v50 = vrot.slane %v1470_v47, 7  ;;  %v1473_v52 = vrot.slane %v1470_v47, 1  ;;  %v1485_v59 = vmul.f32 %v1484_v49, %v1470_v47 }
 0xbeb   : > { %v1472_v55 = vsel %vm499_vm2, 0.0, %v1471_v50  ;;  %v1474_v57 = vsel %vm504_vm1, 0.0, %v1473_v52  ;;  %v2261_v52 = vld [vmem:[%s3929_s7 + $0x30] sm:$0xff] }
 0xbec   : > { %v1480_v58 = vmul.f32 %v1479_v48, %v1472_v55  ;;  %v1491_v51 = vmul.f32 %v1490_v53, %v1474_v57  ;;  %v2262_v53 = vld [vmem:[%s3929_s7 + $0x38] sm:$0xff] }
 0xbed   : > { %v2969_v55 = vpack.c.bf16 %v2262_v53, %v2261_v52  ;;  %v2290_v52 = vld [vmem:[%s3927_s5 + $0x110] sm:$0xff]  ;;  %v2291_v53 = vld [vmem:[%s3927_s5 + $0x118] sm:$0xff] }
 0xbee   : > { %v1486_v60 = vadd.f32 %v1485_v59, %v1480_v58 }
 0xbf0   : > { %v1492_v62 = vadd.f32 %v1491_v51, %v1486_v60 }
 0xbf2   : > { %v1500_v63 = vadd.f32 %v2241_v61, %v1492_v62  ;;  %v2269_v61 = vld [vmem:[%s3933_s11 + $0x40] sm:$0xff]  ;;  %v2270_v62 = vld [vmem:[%s3933_s11 + $0x48] sm:$0xff] }
 0xbf4   : > { %v1501_v1 = vmax.f32 %v1500_v63, 0.0  ;;  %v2972_v63 = vpack.c.bf16 %v2270_v62, %v2269_v61 }
 0xbf6   : > { %2699 = vmatmul.mubr.msk.f32.vlgmr.msra.gmra.mrb[10].mxu1 %vm519_vm4, %v1501_v1  ;;  %v2271_v1 = vld [vmem:[%s3933_s11 + $0x50] sm:$0xff] }
 0xbf7   : > { %2736 = vmatprep.mubr.msk.f32.mxu1 %vm3031_vm0, %v3032_v11 }
 0xcc9   : > { %v1586_v28 = vpop.f32.mrb[10].mxu1 }
 0xcca   : > { %v1587_v29 = vadd.f32 %v2242_v27, %v1586_v28  ;;  %v2700_v30 = vpop.f32.mrb[11].mxu1 }
 0xccc   : > { %v1590_v31 = vadd.f32 %v1587_v29, %v3642_v26 }
 0xcce   : > { %v1591_v32 = vadd.f32 %v1590_v31, %v3471_v56  ;;  %v2259_v56 = vld [vmem:[%s3929_s7 + $0x20] sm:$0xff] }
 0xccf   : > { %v2966_v43 = vpack.c.bf16 %v2260_v40, %v2259_v56  ;;  %v2285_v56 = vld [vmem:[%s3927_s5 + $0xe8] sm:$0xff] }
 0xcd0   : > { %1612 = vrot.lane.b32.xlu1 %v1591_v32, %s3033_s17  ;;  %v1609_v33 = vrot.slane %v1591_v32, 1  ;;  %v1607_v35 = vrot.slane %v1591_v32, 7 }
 0xcd1   : > { %2967 = vmatpush3.bf16.msra.mxu1 %v2966_v43  ;;  %v2286_v43 = vld [vmem:[%s3927_s5 + $0xf0] sm:$0xff] }
 0xcd2   : > { %v1610_v34 = vsel %vm504_vm1, 0.0, %v1609_v33  ;;  %v1608_v37 = vsel %vm499_vm2, 0.0, %v1607_v35  ;;  %2968 = vmatprep.subr.bf16.mxu1 %v3030_v4  ;;  %v2281_v35 = vld [vmem:[%s3927_s5 + $0xc8] sm:$0xff] }
 0xcd3   : > { %1616 = vrot.lane.b32.xlu0 %v1610_v34, %s3034_s22 }
 0xcd5   : > { %2970 = vmatpush3.bf16.msra.mxu1 %v2969_v55  ;;  %v2999_v55 = vpack.c.bf16 %v2291_v53, %v2290_v52 }
 0xcd6   : > { %2971 = vmatprep.subr.bf16.mxu1 %v3030_v4 }
 0xd42   : > { %v1613_v36 = vpop.permute.xlu1 %1612 }
 0xd43   : > { %v1619_v38 = vsel %vm517_vm3, %v1608_v37, %v1613_v36  ;;  %v2282_v36 = vld [vmem:[%s3927_s5 + $0xd0] sm:$0xff]  ;;  %v2984_v37 = vpack.c.bf16 %v2281_v35, %v2280_v46 }
 0xd45   : > { %v1617_v39 = vpop.permute.xlu0 %1616 }
 0xd46   : > { %v1620_v26 = vsel %vm519_vm4, %v1619_v38, %v1617_v39  ;;  %v2283_v38 = vld [vmem:[%s3927_s5 + $0xd8] sm:$0xff] }
 0xd47   : > { %2726 = vmatmul.mubr.msk.f32.vlgmr.msra.gmra.mrb[8].mxu0 %vm527_vm5, %v1620_v26  ;;  %v2987_v39 = vpack.c.bf16 %v2283_v38, %v2282_v36  ;;  %v2284_v26 = vld [vmem:[%s3927_s5 + $0xe0] sm:$0xff] }
 0xd48   : > { %2782 = vmatprep.mubr.msk.f32.mxu0 %vm3031_vm0, %v3032_v11  ;;  %2985 = vmatpush3.bf16.msra.mxu0 %v2984_v37  ;;  %v2990_v40 = vpack.c.bf16 %v2285_v56, %v2284_v26 }
 0xd49   : > { %2986 = vmatprep.subr.bf16.mxu0 %v3030_v4 }
 0xd4c   : > { %2988 = vmatpush3.bf16.msra.mxu0 %v2987_v39 }
 0xd4d   : > { %2989 = vmatprep.subr.bf16.mxu0 %v3030_v4 }
 0xd50   : > { %2991 = vmatpush3.bf16.msra.mxu0 %v2990_v40 }
 0xd51   : > { %2992 = vmatprep.subr.bf16.mxu0 %v3030_v4 }
 0xe1a   : > { %v1696_v45 = vpop.f32.mrb[8].mxu0 }
 0xe1b   : > { %v3769_v47 = vadd.f32 %v2257_v44, %v1696_v45  ;;  %v2727_v48 = vpop.f32.mrb[9].mxu0  ;;  %v2287_v44 = vld [vmem:[%s3927_s5 + $0xf8] sm:$0xff] }
 0xe1c   : > { %v2993_v45 = vpack.c.bf16 %v2287_v44, %v2286_v43  ;;  %v2288_v48 = vld [vmem:[%s3927_s5 + $0x100] sm:$0xff] }
 0xe1d   : > { %v1700_v49 = vmul.f32 0.5, %v3769_v47 }
 0xe1e   : > { %2994 = vmatpush3.bf16.msra.mxu0 %v2993_v45 }
 0xe1f   : > { %v1701_v50 = vmul.f32 1.442695, %v1700_v49  ;;  %v2289_v49 = vld [vmem:[%s3927_s5 + $0x108] sm:$0xff]  ;;  %2995 = vmatprep.subr.bf16.mxu0 %v3030_v4 }
 0xe21   : > { %3018 = vpow2.f32 %v1701_v50  ;;  %v2996_v50 = vpack.c.bf16 %v2289_v49, %v2288_v48 }
 0xe23   : > { %2997 = vmatpush3.bf16.msra.mxu0 %v2996_v50 }
 0xe24   : > { %2998 = vmatprep.subr.bf16.mxu0 %v3030_v4 }
 0xe27   : > { %3000 = vmatpush3.bf16.msra.mxu0 %v2999_v55 }
 0xe2b   : > { %v3019_v57 = vpop.eup %3018 }
 0xe2c   : > { %v1703_v58 = vmul.f32 %v3019_v57, %v3632_v21  ;;  %v2278_v57 = vld [vmem:[%s3934_s12 + $0x1] ss:$0 sm:$0xff] }
 0xe2e   : > { %1705 = vrot.lane.b32.xlu1 %v1703_v58, %s3035_s28 }
 0xea0   : > { %v1706_v59 = vpop.permute.xlu1 %1705 }
 0xea1   : > { %v3782_v60 = vadd.f32 %v1706_v59, %v3769_v47 }
 0xea3   : > { %v3785_v51 = vadd.f32 %v3782_v60, %v1590_v31 }
 0xea5   : > { %2737 = vmatmul.mubr.msk.f32.vlgmr.msra.gmra.mrb[12].mxu1 %vm517_vm3, %v3785_v51 }
 0xea6   : > { %2755 = vmatprep.mubr.msk.f32.mxu1 %vm3031_vm0, %v3032_v11  ;;  %2973 = vmatpush3.bf16.msra.mxu1 %v2972_v63  ;;  %v2272_v11 = vld [vmem:[%s3933_s11 + $0x58] sm:$0xff] }
 0xea7   : > { %2974 = vmatprep.subr.bf16.mxu1 %v3030_v4  ;;  %v2975_v2 = vpack.c.bf16 %v2272_v11, %v2271_v1 }
 0xeaa   : > { %2976 = vmatpush3.bf16.msra.mxu1 %v2975_v2 }
 0xeab   : > { %2977 = vmatprep.subr.bf16.mxu1 %v3030_v4 }
 0xeae   : > { %2979 = vmatpush3.bf16.msra.mxu1 %v2978_v6 }
 0xeaf   : > { %2980 = vmatprep.subr.bf16.mxu1 %v3030_v4 }
 0xeb2   : > { %2982 = vmatpush3.bf16.msra.mxu1 %v2981_v10 }
 0xf78   : > { %v1792_v14 = vpop.f32.mrb[12].mxu1 }
 0xf79   : > { %v1793_v15 = vadd.f32 %v2264_v12, %v1792_v14  ;;  %v2738_v17 = vpop.f32.mrb[13].mxu1 }
 0xf7b   : > { %v1796_v18 = vmax.f32 %v1793_v15, 0.0 }
 0xf7d   : > { %v1797_v22 = vrot.slane %v1796_v18, 7  ;;  %v1799_v23 = vrot.slane %v1796_v18, 1  ;;  %v1812_v30 = vmul.f32 %v1811_v20, %v1796_v18 }
 0xf7f   : > { %v1798_v27 = vsel %vm499_vm2, 0.0, %v1797_v22  ;;  %v1800_v28 = vsel %vm504_vm1, 0.0, %v1799_v23 }
 0xf80   : > { %v1807_v29 = vmul.f32 %v1806_v19, %v1798_v27  ;;  %v1818_v32 = vmul.f32 %v1817_v24, %v1800_v28 }
 0xf82   : > { %v1813_v31 = vadd.f32 %v1812_v30, %v1807_v29 }
 0xf84   : > { %v1819_v42 = vadd.f32 %v1818_v32, %v1813_v31 }
 0xf86   : > { %v1828_v33 = vadd.f32 %v2268_v41, %v1819_v42 }
 0xf88   : > { %v1829_v34 = vmax.f32 %v1828_v33, 0.0 }
 0xf8a   : > { %2756 = vmatmul.mubr.msk.f32.vlgmr.msra.gmra.mrb[14].mxu1 %vm519_vm4, %v1829_v34 }
0x105d   : > { %v1916_v58 = vpop.f32.mrb[14].mxu1 }
0x105e   : > { %v1917_v59 = vadd.f32 %v2278_v57, %v1916_v58  ;;  %v2757_v61 = vpop.f32.mrb[15].mxu1 }
0x1060   : > { %v1920_v62 = vadd.f32 %v1917_v59, %v3785_v51 }
0x1062   : > { %v1921_v4 = vadd.f32 %v1920_v62, %v3353_v54  ;;  %v2293_v54 = vld [vmem:[%s3928_s6 + $0x2] ss:$0 sm:$0xff] }
0x1064   : > { %1942 = vrot.lane.b32.xlu0 %v1921_v4, %s3033_s17  ;;  %v1939_v63 = vrot.slane %v1921_v4, 1  ;;  %v1937_v11 = vrot.slane %v1921_v4, 7 }
0x1066   : > { %v1940_v1 = vsel %vm504_vm1, 0.0, %v1939_v63  ;;  %v1938_v3 = vsel %vm499_vm2, 0.0, %v1937_v11 }
0x1067   : > { %1946 = vrot.lane.b32.xlu1 %v1940_v1, %s3034_s22 }
0x10d6   : > { %v1943_v2 = vpop.permute.xlu0 %1942 }
0x10d7   : > { %v1949_v5 = vsel %vm517_vm3, %v1938_v3, %v1943_v2 }
0x10d9   : > { %v1947_v6 = vpop.permute.xlu1 %1946 }
0x10da   : > { %v1950_v51 = vsel %vm519_vm4, %v1949_v5, %v1947_v6 }
0x10db   : > { %2783 = vmatmul.mubr.msk.f32.vlgmr.msra.gmra.mrb[10].mxu0 %vm527_vm5, %v1950_v51 }
0x11ae   : > { %v2026_v8 = vpop.f32.mrb[10].mxu0 }
0x11af   : > { %v2027_v9 = vadd.f32 %v2293_v54, %v2026_v8  ;;  %v2784_v10 = vpop.f32.mrb[11].mxu0 }
0x11b1   : > { %v2030_v12 = vmul.f32 0.5, %v2027_v9 }
0x11b3   : > { %v2031_v14 = vmul.f32 1.442695, %v2030_v12 }
0x11b5   : > { %3020 = vpow2.f32 %v2031_v14 }
0x11bf   : > { %v3021_v7 = vpop.eup %3020 }
0x11c0   : > { %2034 = vrot.lane.b32.xlu0 %v3021_v7, %s3033_s17 }
0x11c4   : > { %2044 = vrot.lane.b32.xlu0 %v3616_v13, %s3033_s17 }
0x11c8   : > { %2048 = vrot.lane.b32.xlu0 %v3782_v60, %s3035_s28 }
0x1232   : > { %v2035_v15 = vpop.permute.xlu0 %2034 }
0x1233   : > { %v2037_v16 = vmul.f32 %v2035_v15, %v3632_v21 }
0x1235   : > { %2039 = vrot.lane.b32.xlu1 %v2037_v16, %s3034_s22 }
0x1236   : > { %v2045_v17 = vpop.permute.xlu0 %2044 }
0x1237   : > { %v2059_v18 = vsel %vm517_vm3, %v3639_v25, %v2045_v17 }
0x1238   : > { %v2060_v19 = vsel %vm519_vm4, %v2059_v18, %v2045_v17 }
0x123a   : > { %v2049_v13 = vpop.permute.xlu0 %2048 }
0x123b   : > { %v2061_v20 = vsel %vm527_vm5, %v2060_v19, %v2049_v13 }
0x123c   : > { %2065 = vst [vmem:[%s481_s21] sm:$0xff] %v2061_v20 }
0x12a7   : > { %v2040_v60 = vpop.permute.xlu1 %2039 }
0x12a8   : > { %v2042_v22 = vadd.f32 %v2040_v60, %v2027_v9 }
0x12aa   : > { %2052 = vrot.lane.b32.xlu1 %v2042_v22, %s3034_s22 }
0x12ae   : > { %2056 = vrot.lane.b32.xlu1 %v2027_v9, %s3035_s28 }
0x131c   : > { %v2053_v21 = vpop.permute.xlu1 %2052 }
0x131d   : > { %v2062_v25 = vsel %vm519_vm4, %v3769_v47, %v2053_v21 }
0x1320   : > { %v2057_v23 = vpop.permute.xlu1 %2056 }
0x1321   : > { %v2063_v24 = vsel %vm527_vm5, %v2062_v25, %v2057_v23  ;;  %v2064_v27 = vsel %vm517_vm3, %v2057_v23, %v3596_v0 }
0x1322   : > { %2066 = vst [vmem:[%s481_s21 + $0x8] sm:$0xff] %v2063_v24  ;;  %2067 = vst.msk [vmem:[%s481_s21 + $0x10] sm:$0xff] %vm519_vm4, %v2064_v27 }
0x1323 PF: > { %s24_s29 = sadd.s32 1, %s3028_s29  }
0x1324   : > { %p21_p4 = scmp.ge.s32.totalorder %s24_s29, 4  }
0x1326   :  { %23 = sbr.rel (!%p21_p4) target bundleno = 1 (0x1), region = 131 }

</bundles_post_ra>
